<compile_context>
chip_gen: v5e
topology: v5e:2x2
jax: 0.10.0
libtpu: 0.0.40
codegen_flags: <defaults>
</compile_context>

<pallas_src>
import functools

import jax
import jax.numpy as jnp
from jax.experimental import pallas as pl
from jax.experimental.pallas import tpu as pltpu

BN_EPS = 1e-5
ARCH = [[1, 16, 1, 1], [6, 24, 2, 1], [6, 32, 3, 2], [6, 64, 4, 2],
        [6, 96, 3, 1], [6, 160, 3, 2], [6, 320, 1, 1]]
C_LAST = 4096


# --------------------------- small helpers -----------------------------------

def _pad_rows(W):
    """Row halo (in flattened H*W rows) for a 3x3/pad-1 conv, 8-sublane aligned."""
    return ((W + 1 + 7) // 8) * 8


def _rep_spec(arr):
    """Whole-array block, same block index every grid step -> stays VMEM resident."""
    nd = arr.ndim
    return pl.BlockSpec(arr.shape, lambda n, _nd=nd: (0,) * _nd)


def _apply_col_mask(sl, kw, mask_l, mask_r):
    """Zero rows whose flattened row-shift wrapped across a W boundary."""
    if kw == 0:
        return jnp.where(mask_l, sl, 0.0)
    if kw == 2:
        return jnp.where(mask_r, sl, 0.0)
    return sl


def _fill_halo(hp_ref, interior, M, PAD):
    """Write interior rows and zero only the top/bottom halo rows (VMEM)."""
    C = hp_ref.shape[-1]
    zeros_halo = jnp.zeros((PAD, C), jnp.float32)
    hp_ref[0:PAD, :] = zeros_halo
    hp_ref[PAD + M:M + 2 * PAD, :] = zeros_halo
    hp_ref[PAD:PAD + M, :] = interior


# --------------------------- Pallas kernels -----------------------------------

def _stem_kernel(x_ref, w_ref, b_ref, o_ref, hp_ref, *, H, W):
    """3x3 conv (stride 1, pad 1) + folded BN + ReLU6 as 9 accumulated MXU dots.

    Works on the flattened (H*W, Cin) view; row halo lives in a VMEM scratch.
    """
    M = H * W
    PAD = _pad_rows(W)
    cout = o_ref.shape[-1]

    _fill_halo(hp_ref, x_ref[...].astype(jnp.float32), M, PAD)

    j = jax.lax.broadcasted_iota(jnp.int32, (M, 1), 0) % W
    mask_l = j >= 1
    mask_r = j <= W - 2

    acc = jnp.zeros((M, cout), jnp.float32)
    for kh in range(3):
        for kw in range(3):
            d = (kh - 1) * W + (kw - 1)
            sl = _apply_col_mask(hp_ref[PAD + d:PAD + d + M, :], kw, mask_l, mask_r)
            acc = acc + jnp.dot(sl.astype(jnp.bfloat16), w_ref[kh * 3 + kw],
                                preferred_element_type=jnp.float32)
    o_ref[...] = jnp.clip(acc + b_ref[...], 0.0, 6.0).astype(o_ref.dtype)


def _bneck_kernel(*refs, H, W, Ho, Wo, stride, has_expand, residual):
    """Fused inverted-residual block: expand 1x1 -> dw 3x3 -> project 1x1 [+res]."""
    if has_expand:
        (x_ref, we_ref, be_ref, wd_ref, bd_ref,
         wp_ref, bp_ref, o_ref, hp_ref) = refs
    else:
        x_ref, wd_ref, bd_ref, wp_ref, bp_ref, o_ref, hp_ref = refs

    M = H * W
    PAD = _pad_rows(W)
    x = x_ref[...]                                               # (M, Cin) bf16

    # expand 1x1 conv + BN + ReLU6 (MXU, f32 accumulation)
    if has_expand:
        h = jnp.dot(x, we_ref[...], preferred_element_type=jnp.float32)
        h = jnp.clip(h + be_ref[...], 0.0, 6.0)
    else:
        h = x.astype(jnp.float32)
    C = h.shape[1]

    # depthwise 3x3 + BN + ReLU6: zero halo in VMEM scratch, 9 row-shift taps (f32 VPU)
    _fill_halo(hp_ref, h, M, PAD)
    j = jax.lax.broadcasted_iota(jnp.int32, (M, 1), 0) % W
    mask_l = j >= 1
    mask_r = j <= W - 2

    acc = jnp.zeros((M, C), jnp.float32)
    for kh in range(3):
        for kw in range(3):
            d = (kh - 1) * W + (kw - 1)
            sl = _apply_col_mask(hp_ref[PAD + d:PAD + d + M, :], kw, mask_l, mask_r)
            acc = acc + sl * wd_ref[kh * 3 + kw:kh * 3 + kw + 1, :]
    dwo = jnp.clip(acc + bd_ref[...], 0.0, 6.0)

    # stride > 1: keep only the strided output rows before project / HBM writeback
    # (0/1 selection matmul built from iota, all in VMEM).
    if stride > 1:
        Mo = Ho * Wo
        a = jax.lax.broadcasted_iota(jnp.int32, (Mo, M), 0)
        r = jax.lax.broadcasted_iota(jnp.int32, (Mo, M), 1)
        tgt = (stride * (a // Wo)) * W + stride * (a % Wo)
        sel = (r == tgt).astype(jnp.bfloat16)
        dwo = jnp.dot(sel, dwo.astype(jnp.bfloat16),
                      preferred_element_type=jnp.float32)

    # project 1x1 conv + BN (no ReLU), optional residual (linear bottleneck)
    y = jnp.dot(dwo.astype(jnp.bfloat16), wp_ref[...],
                preferred_element_type=jnp.float32) + bp_ref[...]
    if residual:
        y = y + x.astype(jnp.float32)
    o_ref[...] = y.astype(o_ref.dtype)


def _head_kernel(x_ref, wh_ref, bh_ref, wf_ref, bf_ref, o_ref):
    """Head 1x1 conv + BN + ReLU6 -> global average pool -> classifier Linear."""
    m_rows = x_ref.shape[0]
    h = jnp.dot(x_ref[...], wh_ref[...], preferred_element_type=jnp.float32)
    h = jnp.clip(h + bh_ref[...], 0.0, 6.0)                       # (M, 4096) f32
    pooled = jnp.sum(h, axis=0, keepdims=True) * (1.0 / float(m_rows))
    logits = jnp.dot(pooled.astype(jnp.bfloat16), wf_ref[...],
                     preferred_element_type=jnp.float32) + bf_ref[...]
    o_ref[...] = logits
    # TODO(synk): nn.Dropout(p=0.2) is identity in inference mode; not modeled.


# --------------------------- kernel wrappers -----------------------------------

def stem_conv3x3(x, p, H, W):
    N, M, Cin = x.shape
    Cout = p['w'].shape[-1]
    return pl.pallas_call(
        functools.partial(_stem_kernel, H=H, W=W),
        out_shape=jax.ShapeDtypeStruct((N, M, Cout), jnp.bfloat16),
        grid=(N,),
        in_specs=[pl.BlockSpec((None, M, Cin), lambda n: (n, 0, 0)),
                  _rep_spec(p['w']), _rep_spec(p['b'])],
        out_specs=pl.BlockSpec((None, M, Cout), lambda n: (n, 0, 0)),
        scratch_shapes=[pltpu.VMEM((M + 2 * _pad_rows(W), Cin), jnp.float32)],
        compiler_params=pltpu.CompilerParams(
            dimension_semantics=("parallel",)),
    )(x, p['w'], p['b'])


def bottleneck_block(x, blk, H, W):
    N, M, Cin = x.shape
    stride = blk['stride']
    Ho, Wo = (H - 1) // stride + 1, (W - 1) // stride + 1
    Mo = Ho * Wo
    Cexp = blk['wd'].shape[1]
    Cout = blk['wp'].shape[1]

    args = [x]
    in_specs = [pl.BlockSpec((None, M, Cin), lambda n: (n, 0, 0))]
    if blk['has_expand']:
        args += [blk['we'], blk['be']]
        in_specs += [_rep_spec(blk['we']), _rep_spec(blk['be'])]
    args += [blk['wd'], blk['bd'], blk['wp'], blk['bp']]
    in_specs += [_rep_spec(blk['wd']), _rep_spec(blk['bd']),
                 _rep_spec(blk['wp']), _rep_spec(blk['bp'])]

    y = pl.pallas_call(
        functools.partial(_bneck_kernel, H=H, W=W, Ho=Ho, Wo=Wo,
                          stride=stride, has_expand=blk['has_expand'],
                          residual=blk['residual']),
        out_shape=jax.ShapeDtypeStruct((N, Mo, Cout), jnp.bfloat16),
        grid=(N,),
        in_specs=in_specs,
        out_specs=pl.BlockSpec((None, Mo, Cout), lambda n: (n, 0, 0)),
        scratch_shapes=[pltpu.VMEM((M + 2 * _pad_rows(W), Cexp), jnp.float32)],
        compiler_params=pltpu.CompilerParams(
            dimension_semantics=("parallel",)),
    )(*args)
    return y, Ho, Wo


def head_pool_fc(x, head, fc):
    N, M, C = x.shape
    O = fc['w'].shape[1]
    return pl.pallas_call(
        _head_kernel,
        out_shape=jax.ShapeDtypeStruct((N, O), jnp.float32),
        grid=(N,),
        in_specs=[pl.BlockSpec((None, M, C), lambda n: (n, 0, 0)),
                  _rep_spec(head['w']), _rep_spec(head['b']),
                  _rep_spec(fc['w']), _rep_spec(fc['b'])],
        out_specs=pl.BlockSpec((1, O), lambda n: (n, 0)),
        compiler_params=pltpu.CompilerParams(
            dimension_semantics=("parallel",)),
    )(x, head['w'], head['b'], fc['w'], fc['b'])


# --------------------------- parameters ----------------------------------------

def _kaiming(key, shape, fan_out):
    return ((2.0 / float(fan_out)) ** 0.5
            * jax.random.normal(key, shape, dtype=jnp.float32))


def init_params(key, cin, output_size):
    keys = iter(jax.random.split(key, 64))
    bn_s = 1.0 / (1.0 + BN_EPS) ** 0.5          # folded eval-mode BatchNorm scale

    params = {}
    cout = 32
    w_stem = _kaiming(next(keys), (3, 3, cin, cout), cout * 9) * bn_s
    params['stem'] = dict(w=w_stem.reshape(9, cin, cout).astype(jnp.bfloat16),
                          b=jnp.zeros((1, cout), jnp.float32))
    c_in = cout

    blocks = []
    for t, c, n, s in ARCH:
        for i in range(n):
            sd = s if i == 0 else 1
            c_exp = c_in * t
            blk = dict(stride=sd, has_expand=(t != 1),
                       residual=(c_in == c and sd == 1))
            if t != 1:
                blk['we'] = (_kaiming(next(keys), (c_in, c_exp), c_exp)
                             * bn_s).astype(jnp.bfloat16)
                blk['be'] = jnp.zeros((1, c_exp), jnp.float32)
            # depthwise weights stay f32: they feed the VPU, not the MXU
            # (PyTorch fan_out for grouped conv = cout*k*k/groups = 9)
            blk['wd'] = _kaiming(next(keys), (9, c_exp), 9) * bn_s
            blk['bd'] = jnp.zeros((1, c_exp), jnp.float32)
            blk['wp'] = (_kaiming(next(keys), (c_exp, c), c)
                         * bn_s).astype(jnp.bfloat16)
            blk['bp'] = jnp.zeros((1, c), jnp.float32)
            blocks.append(blk)
            c_in = c
    params['blocks'] = blocks

    params['head'] = dict(
        w=(_kaiming(next(keys), (c_in, C_LAST), C_LAST) * bn_s).astype(jnp.bfloat16),
        b=jnp.zeros((1, C_LAST), jnp.float32))
    params['fc'] = dict(
        w=(0.01 * jax.random.normal(next(keys), (C_LAST, output_size),
                                    dtype=jnp.float32)).astype(jnp.bfloat16),
        b=jnp.zeros((1, output_size), jnp.float32))
    return params


# --------------------------- forward --------------------------------------------

def mobilenetv2_forward(params, x_nchw):
    N, Cin, H, W = x_nchw.shape
    # NCHW (PyTorch) -> NHWC -> flattened (N, H*W, C): channels on the lane dim.
    x = jnp.transpose(x_nchw, (0, 2, 3, 1)).reshape(N, H * W, Cin)
    x = x.astype(jnp.bfloat16)

    x = stem_conv3x3(x, params['stem'], H, W)                 # 3x3, stride 1
    for blk in params['blocks']:                              # 17 fused blocks
        x, H, W = bottleneck_block(x, blk, H, W)
    return head_pool_fc(x, params['head'], params['fc'])      # head+pool+linear


# --------------------------- main -----------------------------------------------

if __name__ == "__main__":
    key = jax.random.PRNGKey(0)
    k_x, k_p = jax.random.split(key)

    in_shape = (3, 16, 16)      # (C, H, W) as in the PyTorch module
    batch = 2
    output_size = 10

    x = jax.random.normal(k_x, (batch,) + in_shape, dtype=jnp.float32)
    params = init_params(k_p, in_shape[0], output_size)

    out = mobilenetv2_forward(params, x)
    out = jax.block_until_ready(out)

    assert out.shape == (batch, output_size), out.shape
    assert bool(jnp.all(jnp.isfinite(out)))
    print("KERNEL_OK")
</pallas_src>

<mosaic_0001>
module attributes {stable_mosaic.version = 11 : i64} {
  func.func @_stem_kernel(%arg0: i32, %arg1: memref<1x256x3xbf16, #tpu.memory_space<vmem>>, %arg2: memref<9x3x32xbf16, #tpu.memory_space<vmem>>, %arg3: memref<1x32xf32, #tpu.memory_space<vmem>>, %arg4: memref<1x256x32xbf16, #tpu.memory_space<vmem>>, %arg5: memref<304x3xf32, #tpu.memory_space<vmem>>) attributes {dimension_semantics = [#tpu.dimension_semantics<parallel>], iteration_bounds = array<i64: 2>, scalar_prefetch = 0 : i64, scratch_operands = 1 : i64, tpu.core_type = #tpu.core_type<tc>, window_params = [{transform_indices = @transform_0, window_bounds = array<i64: 1, 256, 3>}, {pipeline_mode = #tpu.pipeline_mode<synchronous>, transform_indices = @transform_1, window_bounds = array<i64: 9, 3, 32>}, {pipeline_mode = #tpu.pipeline_mode<synchronous>, transform_indices = @transform_2, window_bounds = array<i64: 1, 32>}, {transform_indices = @transform_3, window_bounds = array<i64: 1, 256, 32>}]} {
    %c0 = arith.constant 0 : index
    %c0_0 = arith.constant 0 : index
    %c0_1 = arith.constant 0 : index
    %0 = vector.load %arg1[%c0, %c0_0, %c0_1] : memref<1x256x3xbf16, #tpu.memory_space<vmem>>, vector<1x256x3xbf16>
    %1 = vector.shape_cast %0 : vector<1x256x3xbf16> to vector<256x3xbf16>
    %2 = arith.extf %1 : vector<256x3xbf16> to vector<256x3xf32>
    %cst = arith.constant 0.000000e+00 : f32
    %3 = vector.broadcast %cst : f32 to vector<24x3xf32>
    %c0_2 = arith.constant 0 : index
    %c0_3 = arith.constant 0 : index
    %4 = vector.load %arg5[%c0_2, %c0_3] : memref<304x3xf32, #tpu.memory_space<vmem>>, vector<24x3xf32>
    tpu.vector_store %arg5[%c0_2, %c0_3], %3 {strides = array<i32>} : memref<304x3xf32, #tpu.memory_space<vmem>>, vector<24x3xf32>,
    %c280 = arith.constant 280 : index
    %c0_4 = arith.constant 0 : index
    %5 = vector.load %arg5[%c280, %c0_4] : memref<304x3xf32, #tpu.memory_space<vmem>>, vector<24x3xf32>
    tpu.vector_store %arg5[%c280, %c0_4], %3 {strides = array<i32>} : memref<304x3xf32, #tpu.memory_space<vmem>>, vector<24x3xf32>,
    %c24 = arith.constant 24 : index
    %c0_5 = arith.constant 0 : index
    %6 = vector.load %arg5[%c24, %c0_5] : memref<304x3xf32, #tpu.memory_space<vmem>>, vector<256x3xf32>
    tpu.vector_store %arg5[%c24, %c0_5], %2 {strides = array<i32>} : memref<304x3xf32, #tpu.memory_space<vmem>>, vector<256x3xf32>,
    %7 = tpu.iota {dimensions = array<i32: 0>} : vector<256x1xi32>
    %c16_i32 = arith.constant 16 : i32
    %c0_i32 = arith.constant 0 : i32
    %8 = arith.cmpi eq, %c16_i32, %c0_i32 : i32
    %c1_i32 = arith.constant 1 : i32
    %9 = arith.select %8, %c1_i32, %c16_i32 : i32
    %10 = vector.broadcast %9 : i32 to vector<256x1xi32>
    %11 = arith.remsi %7, %10 : vector<256x1xi32>
    %c0_i32_6 = arith.constant 0 : i32
    %12 = vector.broadcast %c0_i32_6 : i32 to vector<256x1xi32>
    %13 = arith.cmpi ne, %11, %12 : vector<256x1xi32>
    %c0_i32_7 = arith.constant 0 : i32
    %14 = vector.broadcast %c0_i32_7 : i32 to vector<256x1xi32>
    %15 = arith.cmpi slt, %11, %14 : vector<256x1xi32>
    %c0_i32_8 = arith.constant 0 : i32
    %16 = arith.cmpi slt, %9, %c0_i32_8 : i32
    %17 = vector.broadcast %16 : i1 to vector<256x1xi1>
    %18 = vector.broadcast %17 : vector<256x1xi1> to vector<256x1xi1>
    %19 = arith.xori %15, %18 : vector<256x1xi1>
    %20 = arith.andi %19, %13 : vector<256x1xi1>
    %21 = vector.broadcast %9 : i32 to vector<256x1xi32>
    %22 = arith.addi %11, %21 : vector<256x1xi32>
    %23 = arith.select %20, %22, %11 : vector<256x1xi1>, vector<256x1xi32>
    %c1_i32_9 = arith.constant 1 : i32
    %24 = vector.broadcast %c1_i32_9 : i32 to vector<256x1xi32>
    %25 = arith.cmpi sge, %23, %24 : vector<256x1xi32>
    %c14_i32 = arith.constant 14 : i32
    %26 = vector.broadcast %c14_i32 : i32 to vector<256x1xi32>
    %27 = arith.cmpi sle, %23, %26 : vector<256x1xi32>
    %cst_10 = arith.constant 0.000000e+00 : f32
    %28 = vector.broadcast %cst_10 : f32 to vector<256x32xf32>
    %c7 = arith.constant 7 : index
    %c0_11 = arith.constant 0 : index
    %29 = vector.load %arg5[%c7, %c0_11] : memref<304x3xf32, #tpu.memory_space<vmem>>, vector<256x3xf32>
    %cst_12 = arith.constant 0.000000e+00 : f32
    %30 = vector.shape_cast %25 : vector<256x1xi1> to vector<256x1xi1>
    %31 = vector.broadcast %30 : vector<256x1xi1> to vector<256x3xi1>
    %32 = vector.broadcast %cst_12 : f32 to vector<256x3xf32>
    %33 = arith.select %31, %29, %32 : vector<256x3xi1>, vector<256x3xf32>
    %34 = arith.truncf %33 : vector<256x3xf32> to vector<256x3xbf16>
    %c0_13 = arith.constant 0 : index
    %c0_14 = arith.constant 0 : index
    %c0_15 = arith.constant 0 : index
    %35 = vector.load %arg2[%c0_13, %c0_14, %c0_15] : memref<9x3x32xbf16, #tpu.memory_space<vmem>>, vector<1x3x32xbf16>
    %36 = vector.shape_cast %35 : vector<1x3x32xbf16> to vector<3x32xbf16>
    %cst_16 = arith.constant dense<0.000000e+00> : vector<256x32xf32>
    %37 = tpu.matmul %34, %36, %cst_16 {dimension_numbers = #tpu.dot_dimension_numbers<[1], [0], [0], [1], [0, 0, 1, 1], [], []>} : vector<256x3xbf16>, vector<3x32xbf16>, vector<256x32xf32> -> vector<256x32xf32>
    %38 = arith.addf %28, %37 : vector<256x32xf32>
    %c8 = arith.constant 8 : index
    %c0_17 = arith.constant 0 : index
    %39 = vector.load %arg5[%c8, %c0_17] : memref<304x3xf32, #tpu.memory_space<vmem>>, vector<256x3xf32>
    %40 = arith.truncf %39 : vector<256x3xf32> to vector<256x3xbf16>
    %c1 = arith.constant 1 : index
    %c0_18 = arith.constant 0 : index
    %c0_19 = arith.constant 0 : index
    %41 = vector.load %arg2[%c1, %c0_18, %c0_19] : memref<9x3x32xbf16, #tpu.memory_space<vmem>>, vector<1x3x32xbf16>
    %42 = vector.shape_cast %41 : vector<1x3x32xbf16> to vector<3x32xbf16>
    %cst_20 = arith.constant dense<0.000000e+00> : vector<256x32xf32>
    %43 = tpu.matmul %40, %42, %cst_20 {dimension_numbers = #tpu.dot_dimension_numbers<[1], [0], [0], [1], [0, 0, 1, 1], [], []>} : vector<256x3xbf16>, vector<3x32xbf16>, vector<256x32xf32> -> vector<256x32xf32>
    %44 = arith.addf %38, %43 : vector<256x32xf32>
    %c9 = arith.constant 9 : index
    %c0_21 = arith.constant 0 : index
    %45 = vector.load %arg5[%c9, %c0_21] : memref<304x3xf32, #tpu.memory_space<vmem>>, vector<256x3xf32>
    %cst_22 = arith.constant 0.000000e+00 : f32
    %46 = vector.shape_cast %27 : vector<256x1xi1> to vector<256x1xi1>
    %47 = vector.broadcast %46 : vector<256x1xi1> to vector<256x3xi1>
    %48 = vector.broadcast %cst_22 : f32 to vector<256x3xf32>
    %49 = arith.select %47, %45, %48 : vector<256x3xi1>, vector<256x3xf32>
    %50 = arith.truncf %49 : vector<256x3xf32> to vector<256x3xbf16>
    %c2 = arith.constant 2 : index
    %c0_23 = arith.constant 0 : index
    %c0_24 = arith.constant 0 : index
    %51 = vector.load %arg2[%c2, %c0_23, %c0_24] : memref<9x3x32xbf16, #tpu.memory_space<vmem>>, vector<1x3x32xbf16>
    %52 = vector.shape_cast %51 : vector<1x3x32xbf16> to vector<3x32xbf16>
    %cst_25 = arith.constant dense<0.000000e+00> : vector<256x32xf32>
    %53 = tpu.matmul %50, %52, %cst_25 {dimension_numbers = #tpu.dot_dimension_numbers<[1], [0], [0], [1], [0, 0, 1, 1], [], []>} : vector<256x3xbf16>, vector<3x32xbf16>, vector<256x32xf32> -> vector<256x32xf32>
    %54 = arith.addf %44, %53 : vector<256x32xf32>
    %c23 = arith.constant 23 : index
    %c0_26 = arith.constant 0 : index
    %55 = vector.load %arg5[%c23, %c0_26] : memref<304x3xf32, #tpu.memory_space<vmem>>, vector<256x3xf32>
    %cst_27 = arith.constant 0.000000e+00 : f32
    %56 = vector.shape_cast %25 : vector<256x1xi1> to vector<256x1xi1>
    %57 = vector.broadcast %56 : vector<256x1xi1> to vector<256x3xi1>
    %58 = vector.broadcast %cst_27 : f32 to vector<256x3xf32>
    %59 = arith.select %57, %55, %58 : vector<256x3xi1>, vector<256x3xf32>
    %60 = arith.truncf %59 : vector<256x3xf32> to vector<256x3xbf16>
    %c3 = arith.constant 3 : index
    %c0_28 = arith.constant 0 : index
    %c0_29 = arith.constant 0 : index
    %61 = vector.load %arg2[%c3, %c0_28, %c0_29] : memref<9x3x32xbf16, #tpu.memory_space<vmem>>, vector<1x3x32xbf16>
    %62 = vector.shape_cast %61 : vector<1x3x32xbf16> to vector<3x32xbf16>
    %cst_30 = arith.constant dense<0.000000e+00> : vector<256x32xf32>
    %63 = tpu.matmul %60, %62, %cst_30 {dimension_numbers = #tpu.dot_dimension_numbers<[1], [0], [0], [1], [0, 0, 1, 1], [], []>} : vector<256x3xbf16>, vector<3x32xbf16>, vector<256x32xf32> -> vector<256x32xf32>
    %64 = arith.addf %54, %63 : vector<256x32xf32>
    %c24_31 = arith.constant 24 : index
    %c0_32 = arith.constant 0 : index
    %65 = vector.load %arg5[%c24_31, %c0_32] : memref<304x3xf32, #tpu.memory_space<vmem>>, vector<256x3xf32>
    %66 = arith.truncf %65 : vector<256x3xf32> to vector<256x3xbf16>
    %c4 = arith.constant 4 : index
    %c0_33 = arith.constant 0 : index
    %c0_34 = arith.constant 0 : index
    %67 = vector.load %arg2[%c4, %c0_33, %c0_34] : memref<9x3x32xbf16, #tpu.memory_space<vmem>>, vector<1x3x32xbf16>
    %68 = vector.shape_cast %67 : vector<1x3x32xbf16> to vector<3x32xbf16>
    %cst_35 = arith.constant dense<0.000000e+00> : vector<256x32xf32>
    %69 = tpu.matmul %66, %68, %cst_35 {dimension_numbers = #tpu.dot_dimension_numbers<[1], [0], [0], [1], [0, 0, 1, 1], [], []>} : vector<256x3xbf16>, vector<3x32xbf16>, vector<256x32xf32> -> vector<256x32xf32>
    %70 = arith.addf %64, %69 : vector<256x32xf32>
    %c25 = arith.constant 25 : index
    %c0_36 = arith.constant 0 : index
    %71 = vector.load %arg5[%c25, %c0_36] : memref<304x3xf32, #tpu.memory_space<vmem>>, vector<256x3xf32>
    %cst_37 = arith.constant 0.000000e+00 : f32
    %72 = vector.shape_cast %27 : vector<256x1xi1> to vector<256x1xi1>
    %73 = vector.broadcast %72 : vector<256x1xi1> to vector<256x3xi1>
    %74 = vector.broadcast %cst_37 : f32 to vector<256x3xf32>
    %75 = arith.select %73, %71, %74 : vector<256x3xi1>, vector<256x3xf32>
    %76 = arith.truncf %75 : vector<256x3xf32> to vector<256x3xbf16>
    %c5 = arith.constant 5 : index
    %c0_38 = arith.constant 0 : index
    %c0_39 = arith.constant 0 : index
    %77 = vector.load %arg2[%c5, %c0_38, %c0_39] : memref<9x3x32xbf16, #tpu.memory_space<vmem>>, vector<1x3x32xbf16>
    %78 = vector.shape_cast %77 : vector<1x3x32xbf16> to vector<3x32xbf16>
    %cst_40 = arith.constant dense<0.000000e+00> : vector<256x32xf32>
    %79 = tpu.matmul %76, %78, %cst_40 {dimension_numbers = #tpu.dot_dimension_numbers<[1], [0], [0], [1], [0, 0, 1, 1], [], []>} : vector<256x3xbf16>, vector<3x32xbf16>, vector<256x32xf32> -> vector<256x32xf32>
    %80 = arith.addf %70, %79 : vector<256x32xf32>
    %c39 = arith.constant 39 : index
    %c0_41 = arith.constant 0 : index
    %81 = vector.load %arg5[%c39, %c0_41] : memref<304x3xf32, #tpu.memory_space<vmem>>, vector<256x3xf32>
    %cst_42 = arith.constant 0.000000e+00 : f32
    %82 = vector.shape_cast %25 : vector<256x1xi1> to vector<256x1xi1>
    %83 = vector.broadcast %82 : vector<256x1xi1> to vector<256x3xi1>
    %84 = vector.broadcast %cst_42 : f32 to vector<256x3xf32>
    %85 = arith.select %83, %81, %84 : vector<256x3xi1>, vector<256x3xf32>
    %86 = arith.truncf %85 : vector<256x3xf32> to vector<256x3xbf16>
    %c6 = arith.constant 6 : index
    %c0_43 = arith.constant 0 : index
    %c0_44 = arith.constant 0 : index
    %87 = vector.load %arg2[%c6, %c0_43, %c0_44] : memref<9x3x32xbf16, #tpu.memory_space<vmem>>, vector<1x3x32xbf16>
    %88 = vector.shape_cast %87 : vector<1x3x32xbf16> to vector<3x32xbf16>
    %cst_45 = arith.constant dense<0.000000e+00> : vector<256x32xf32>
    %89 = tpu.matmul %86, %88, %cst_45 {dimension_numbers = #tpu.dot_dimension_numbers<[1], [0], [0], [1], [0, 0, 1, 1], [], []>} : vector<256x3xbf16>, vector<3x32xbf16>, vector<256x32xf32> -> vector<256x32xf32>
    %90 = arith.addf %80, %89 : vector<256x32xf32>
    %c40 = arith.constant 40 : index
    %c0_46 = arith.constant 0 : index
    %91 = vector.load %arg5[%c40, %c0_46] : memref<304x3xf32, #tpu.memory_space<vmem>>, vector<256x3xf32>
    %92 = arith.truncf %91 : vector<256x3xf32> to vector<256x3xbf16>
    %c7_47 = arith.constant 7 : index
    %c0_48 = arith.constant 0 : index
    %c0_49 = arith.constant 0 : index
    %93 = vector.load %arg2[%c7_47, %c0_48, %c0_49] : memref<9x3x32xbf16, #tpu.memory_space<vmem>>, vector<1x3x32xbf16>
    %94 = vector.shape_cast %93 : vector<1x3x32xbf16> to vector<3x32xbf16>
    %cst_50 = arith.constant dense<0.000000e+00> : vector<256x32xf32>
    %95 = tpu.matmul %92, %94, %cst_50 {dimension_numbers = #tpu.dot_dimension_numbers<[1], [0], [0], [1], [0, 0, 1, 1], [], []>} : vector<256x3xbf16>, vector<3x32xbf16>, vector<256x32xf32> -> vector<256x32xf32>
    %96 = arith.addf %90, %95 : vector<256x32xf32>
    %c41 = arith.constant 41 : index
    %c0_51 = arith.constant 0 : index
    %97 = vector.load %arg5[%c41, %c0_51] : memref<304x3xf32, #tpu.memory_space<vmem>>, vector<256x3xf32>
    %cst_52 = arith.constant 0.000000e+00 : f32
    %98 = vector.shape_cast %27 : vector<256x1xi1> to vector<256x1xi1>
    %99 = vector.broadcast %98 : vector<256x1xi1> to vector<256x3xi1>
    %100 = vector.broadcast %cst_52 : f32 to vector<256x3xf32>
    %101 = arith.select %99, %97, %100 : vector<256x3xi1>, vector<256x3xf32>
    %102 = arith.truncf %101 : vector<256x3xf32> to vector<256x3xbf16>
    %c8_53 = arith.constant 8 : index
    %c0_54 = arith.constant 0 : index
    %c0_55 = arith.constant 0 : index
    %103 = vector.load %arg2[%c8_53, %c0_54, %c0_55] : memref<9x3x32xbf16, #tpu.memory_space<vmem>>, vector<1x3x32xbf16>
    %104 = vector.shape_cast %103 : vector<1x3x32xbf16> to vector<3x32xbf16>
    %cst_56 = arith.constant dense<0.000000e+00> : vector<256x32xf32>
    %105 = tpu.matmul %102, %104, %cst_56 {dimension_numbers = #tpu.dot_dimension_numbers<[1], [0], [0], [1], [0, 0, 1, 1], [], []>} : vector<256x3xbf16>, vector<3x32xbf16>, vector<256x32xf32> -> vector<256x32xf32>
    %106 = arith.addf %96, %105 : vector<256x32xf32>
    %c0_57 = arith.constant 0 : index
    %c0_58 = arith.constant 0 : index
    %107 = vector.load %arg3[%c0_57, %c0_58] : memref<1x32xf32, #tpu.memory_space<vmem>>, vector<1x32xf32>
    %108 = vector.broadcast %107 : vector<1x32xf32> to vector<256x32xf32>
    %109 = arith.addf %106, %108 : vector<256x32xf32>
    %cst_59 = arith.constant 0.000000e+00 : f32
    %cst_60 = arith.constant 6.000000e+00 : f32
    %110 = vector.broadcast %cst_59 : f32 to vector<256x32xf32>
    %111 = arith.maximumf %110, %109 : vector<256x32xf32>
    %112 = vector.broadcast %cst_60 : f32 to vector<256x32xf32>
    %113 = arith.minimumf %112, %111 : vector<256x32xf32>
    %114 = arith.truncf %113 : vector<256x32xf32> to vector<256x32xbf16>
    %c0_61 = arith.constant 0 : index
    %c0_62 = arith.constant 0 : index
    %c0_63 = arith.constant 0 : index
    %115 = vector.load %arg4[%c0_61, %c0_62, %c0_63] : memref<1x256x32xbf16, #tpu.memory_space<vmem>>, vector<1x256x32xbf16>
    %116 = vector.shape_cast %115 : vector<1x256x32xbf16> to vector<256x32xbf16>
    %117 = vector.shape_cast %114 : vector<256x32xbf16> to vector<1x256x32xbf16>
    tpu.vector_store %arg4[%c0_61, %c0_62, %c0_63], %117 {strides = array<i32>} : memref<1x256x32xbf16, #tpu.memory_space<vmem>>, vector<1x256x32xbf16>,
    return
  }
  func.func @transform_0(%arg0: i32) -> (i32, i32, i32) {
    %c0_i32 = arith.constant 0 : i32
    %c0_i32_0 = arith.constant 0 : i32
    %c0_i32_1 = arith.constant 0 : i32
    return %arg0, %c0_i32, %c0_i32_0 : i32, i32, i32
  }
  func.func @transform_1(%arg0: i32) -> (i32, i32, i32) {
    %c0_i32 = arith.constant 0 : i32
    %c0_i32_0 = arith.constant 0 : i32
    %c0_i32_1 = arith.constant 0 : i32
    %c0_i32_2 = arith.constant 0 : i32
    return %c0_i32, %c0_i32_0, %c0_i32_1 : i32, i32, i32
  }
  func.func @transform_2(%arg0: i32) -> (i32, i32) {
    %c0_i32 = arith.constant 0 : i32
    %c0_i32_0 = arith.constant 0 : i32
    %c0_i32_1 = arith.constant 0 : i32
    return %c0_i32, %c0_i32_0 : i32, i32
  }
  func.func @transform_3(%arg0: i32) -> (i32, i32, i32) {
    %c0_i32 = arith.constant 0 : i32
    %c0_i32_0 = arith.constant 0 : i32
    %c0_i32_1 = arith.constant 0 : i32
    return %arg0, %c0_i32, %c0_i32_0 : i32, i32, i32
  }
}

</mosaic_0001>

<bundles_post_ra>
// kernel: tpu_custom_call.1
= control target key start
LH: loop header
LB: loop body
LE: loop exit
PB: predicated region body
PF: predicated region fallthrough
CT: control target
= control target key end

     0   :  { %s3522_s12 = smov 0   ;;  %s4611_s0 = inlined_call_operand.vmem [shape: bf16[2,256,3], index: 0, kind: input, shape index: {}]   ;;  %s4612_s1 = inlined_call_operand.vmem [shape: bf16[9,3,32], index: 1, kind: input, shape index: {}]   ;;  %s4613_s2 = inlined_call_operand.vmem [shape: f32[1,32], index: 2, kind: input, shape index: {}]   ;;  %s4614_s3 = inlined_call_operand.vmem [shape: bf16[2,256,32], index: 3, kind: output, shape index: {}]  }
   0x1 LB: > { %s3233_s13 = sadd.s32 4294967295, %s3498_s12   ;;  %p3237_p0 = scmp.ge.s32.totalorder %s3498_s12, 1  ;;  %s3498_s12 = sphi %s3522_s12, %s13_s12  }
   0x2   : > { %p137_p1 = scmp.lt.s32.totalorder %s3498_s12, 3 }
   0x4   : > { %p138_p2 = pnand %p3237_p0, %p137_p1 }
   0x6   : > { %141 = sbr.rel (%p138_p2) target bundleno = 747 (0x2eb), region = 32 }
   0xb   : > { %v3242_v0 = vld [vmem:[%s4612_s1 + $0x2] sm:$0x3]  ;;  %vm999_vm0 = vcmask 1040384   ;;  %vm1000_vm1 = vcmask 1041408   ;;  %p161_p3 = scmp.lt.s32.totalorder %s3233_s13, 1  ;;  %v3500_v1 = vmov 65535  }
   0xc   : > { %v1001_v2 = vsel %vm999_vm0, 4294967295, %v3500_v1  ;;  %vm236_vm2 = vcmask 23552   ;;  %v3275_v3 = vld [vmem:[%s4612_s1 + $0x4] sm:$0x3]  ;;  %v3501_v5 = vmov 0.0  }
   0xd   : > { %v3536_v4 = vsel %vm1000_vm1, %v1001_v2, 0  ;;  %s4837_s13 = smov (!%p161_p3, %s3233_s13), 1  ;;  %238 = vst.msk [vmem:[#allocation2 + $0x8] sm:$0xff] %vm236_vm2, %v3501_v5  ;;  %v3292_v6 = vld [vmem:[%s4612_s1 + $0x6] sm:$0x3] }
   0xe   : > { %v1004_v7 = vand.u32 %v3242_v0, %v3536_v4  ;;  %v1430_v8 = vand.u32 %v3275_v3, %v3536_v4  ;;  %239 = vst.msk [vmem:[#allocation2 + $0x10] sm:$0xff] %vm236_vm2, %v3501_v5  ;;  %v1684_v9 = vand.u32 %v3292_v6, %v3536_v4  ;;  %v900_v10 = vld [vmem:[%s4612_s1] sm:$0x3]  ;;  %v3309_v11 = vld [vmem:[%s4612_s1 + $0x8] sm:$0x3]  ;;  %s3396_s24 = sshll.u32 %s4837_s13, 7 }
   0xf   : > { %237 = vst.msk [vmem:[#allocation2] sm:$0xff] %vm236_vm2, %v3501_v5  ;;  %v1144_v12 = vand.u32 %v3536_v4, %v900_v10  ;;  %v1906_v13 = vand.u32 %v3309_v11, %v3536_v4  ;;  %s3563_s27 = scalar_lea.vmem %s4611_s0, %s3396_s24  ;;  %s4394_s15 = scalar_lea.vmem %s4614_s3, %s3396_s24 }
  0x10   : > { %3477 = vmatpush.bf16.msra.mxu1 %v1004_v7  ;;  %3478 = vmatpush.bf16.msra.mxu2 %v1004_v7  ;;  %240 = vst.msk [vmem:[#allocation2 + $0x118] sm:$0xff] %vm236_vm2, %v3501_v5  ;;  %v3464_v14 = vld [vmem:[%s3563_s27 + $0x18] sm:$0xff]   ;;  %v3465_v21 = vld [vmem:[%s3563_s27 + $0x20] sm:$0xff]   ;;  %v3466_v37 = vld [vmem:[%s3563_s27 + $0x28] sm:$0xff]  }
  0x11   : > { %3479 = vmatpush.bf16.msra.mxu3 %v1004_v7  ;;  %1013 = vmatpush.bf16.msra.mxu0 %v1004_v7  ;;  %v3468_v15 = vld [vmem:[%s3563_s27 + $0x38] sm:$0xff]   ;;  %241 = vst.msk [vmem:[#allocation2 + $0x120] sm:$0xff] %vm236_vm2, %v3501_v5  ;;  %v3412_v17 = vunpack.c.l.bf16 %v3464_v14  ;;  %v3413_v18 = vunpack.c.h.bf16 %v3464_v14  ;;  %v3469_v26 = vld [vmem:[%s3563_s27 + $0x40] sm:$0xff]   ;;  %v3416_v28 = vunpack.c.l.bf16 %v3465_v21  ;;  %v3417_v29 = vunpack.c.h.bf16 %v3465_v21  ;;  %v3470_v43 = vld [vmem:[%s3563_s27 + $0x48] sm:$0xff]  }
  0x12   : > { %v3472_v16 = vld [vmem:[%s3563_s27 + $0x58] sm:$0xff]   ;;  %v3428_v19 = vunpack.c.l.bf16 %v3468_v15  ;;  %242 = vst.msk [vmem:[#allocation2 + $0x128] sm:$0xff] %vm236_vm2, %v3501_v5  ;;  %v3429_v20 = vunpack.c.h.bf16 %v3468_v15  ;;  %v3473_v30 = vld [vmem:[%s3563_s27 + $0x60] sm:$0xff]   ;;  %v3432_v31 = vunpack.c.l.bf16 %v3469_v26  ;;  %v3433_v32 = vunpack.c.h.bf16 %v3469_v26  ;;  %v3474_v49 = vld [vmem:[%s3563_s27 + $0x68] sm:$0xff]  }
  0x13   : > { %249 = vst.msk [vmem:[#allocation2 + $0x48] sm:$0xff] %vm236_vm2, %v3412_v17  ;;  %v3444_v22 = vunpack.c.l.bf16 %v3472_v16  ;;  %v3445_v24 = vunpack.c.h.bf16 %v3472_v16  ;;  %v3399_v33 = vld [vmem:[%s3563_s27] sm:$0xff]   ;;  %v3448_v34 = vunpack.c.l.bf16 %v3473_v30  ;;  %v3449_v36 = vunpack.c.h.bf16 %v3473_v30  ;;  %v3462_v54 = vld [vmem:[%s3563_s27 + $0x8] sm:$0xff]   ;;  %v3467_v57 = vld [vmem:[%s3563_s27 + $0x30] sm:$0xff]  }
  0x14   : > { %1439 = vmatpush.bf16.msrb.mxu2 %v1430_v8  ;;  %1153 = vmatpush.bf16.msrb.mxu1 %v1144_v12  ;;  %v901_v23 = vld [vmem:[#allocation2 + $0x8] sm:$0xff]  ;;  %250 = vst.msk [vmem:[#allocation2 + $0x50] sm:$0xff] %vm236_vm2, %v3413_v18  ;;  %v3400_v39 = vunpack.c.l.bf16 %v3399_v33  ;;  %v3401_v42 = vunpack.c.h.bf16 %v3399_v33  ;;  %v3420_v45 = vunpack.c.l.bf16 %v3466_v37  ;;  %v3421_v48 = vunpack.c.h.bf16 %v3466_v37  ;;  %v3471_v61 = vld [vmem:[%s3563_s27 + $0x50] sm:$0xff]  }
  0x15   : > { %1693 = vmatpush.bf16.msrb.mxu3 %v1684_v9  ;;  %1915 = vmatpush.bf16.msrb.mxu0 %v1906_v13  ;;  %v902_v25 = vld [vmem:[#allocation2 + $0x10] sm:$0xff]  ;;  %257 = vst.msk [vmem:[#allocation2 + $0x88] sm:$0xff] %vm236_vm2, %v3428_v19  ;;  %v3436_v51 = vunpack.c.l.bf16 %v3470_v43  ;;  %v3437_v53 = vunpack.c.h.bf16 %v3470_v43  ;;  %v3452_v55 = vunpack.c.l.bf16 %v3474_v49  ;;  %v3453_v56 = vunpack.c.h.bf16 %v3474_v49 }
  0x16   : > { %v933_v27 = vpack.c.bf16 %v902_v25, %v901_v23  ;;  %258 = vst.msk [vmem:[#allocation2 + $0x90] sm:$0xff] %vm236_vm2, %v3429_v20  ;;  %v3404_v58 = vunpack.c.l.bf16 %v3462_v54  ;;  %v3405_v59 = vunpack.c.h.bf16 %v3462_v54  ;;  %v3424_v60 = vunpack.c.l.bf16 %v3467_v57  ;;  %v3475_v0 = vld [vmem:[%s3563_s27 + $0x70] sm:$0xff]   ;;  %v3360_v54 = vld [vmem:[%s4612_s1 + $0xe] sm:$0x3] }
  0x17   : > { %265 = vst.msk [vmem:[#allocation2 + $0xc8] sm:$0xff] %vm236_vm2, %v3444_v22  ;;  %v3425_v63 = vunpack.c.h.bf16 %v3467_v57  ;;  %v3440_v5 = vunpack.c.l.bf16 %v3471_v61  ;;  %v3441_v7 = vunpack.c.h.bf16 %v3471_v61  ;;  %v3463_v8 = vld [vmem:[%s3563_s27 + $0x10] sm:$0xff]   ;;  %v3456_v11 = vunpack.c.l.bf16 %v3475_v0 }
  0x18   : > { %3243 = vmatmul.msk.bf16.vlgmr.msra.gmra.mxu0 %vm236_vm2, %v933_v27  ;;  %266 = vst.msk [vmem:[#allocation2 + $0xd0] sm:$0xff] %vm236_vm2, %v3445_v24  ;;  %v3457_v13 = vunpack.c.h.bf16 %v3475_v0  ;;  %v3408_v16 = vunpack.c.l.bf16 %v3463_v8  ;;  %v3409_v18 = vunpack.c.h.bf16 %v3463_v8  ;;  %v275_v20 = vlaneseq }
  0x19   : > { %251 = vst.msk [vmem:[#allocation2 + $0x58] sm:$0xff] %vm236_vm2, %v3416_v28 }
  0x1a   : > { %v909_v35 = vld [vmem:[#allocation2 + $0x48] sm:$0xff]  ;;  %252 = vst.msk [vmem:[#allocation2 + $0x60] sm:$0xff] %vm236_vm2, %v3417_v29  ;;  %v3638_v24 = vshrl.u32 %v275_v20, 7 }
  0x1b   : > { %v910_v38 = vld [vmem:[#allocation2 + $0x50] sm:$0xff]  ;;  %259 = vst.msk [vmem:[#allocation2 + $0x98] sm:$0xff] %vm236_vm2, %v3432_v31 }
  0x1c   : > { %v3586_v40 = vpack.c.bf16 %v910_v38, %v909_v35  ;;  %v917_v41 = vld [vmem:[#allocation2 + $0x88] sm:$0xff]  ;;  %260 = vst.msk [vmem:[#allocation2 + $0xa0] sm:$0xff] %vm236_vm2, %v3433_v32  ;;  %v312_v30 = vand.u32 15, %v3638_v24  ;;  %v277_v31 = vadd.s32 8, %v3638_v24 }
  0x1d   : > { %v918_v44 = vld [vmem:[#allocation2 + $0x90] sm:$0xff]  ;;  %267 = vst.msk [vmem:[#allocation2 + $0xd8] sm:$0xff] %vm236_vm2, %v3448_v34 }
  0x1e   : > { %3247 = vmatmul.msk.bf16.vlgmr.msra.gmra.mxu1 %vm236_vm2, %v3586_v40  ;;  %v3593_v46 = vpack.c.bf16 %v918_v44, %v917_v41  ;;  %v925_v47 = vld [vmem:[#allocation2 + $0xc8] sm:$0xff]  ;;  %268 = vst.msk [vmem:[#allocation2 + $0xe0] sm:$0xff] %vm236_vm2, %v3449_v36  ;;  %v319_v35 = vand.u32 15, %v277_v31  ;;  %vm3650_vm3 = vcmp.ge.s32.totalorder %v312_v30, 1 }
  0x1f   : > { %v926_v50 = vld [vmem:[#allocation2 + $0xd0] sm:$0xff]  ;;  %243 = vst.msk [vmem:[#allocation2 + $0x18] sm:$0xff] %vm236_vm2, %v3400_v39 }
  0x20   : > { %3251 = vmatmul.msk.bf16.vlgmr.msra.gmra.mxu2 %vm236_vm2, %v3593_v46  ;;  %v945_v52 = vpack.c.bf16 %v926_v50, %v925_v47  ;;  %244 = vst.msk [vmem:[#allocation2 + $0x20] sm:$0xff] %vm236_vm2, %v3401_v42  ;;  %v911_v1 = vld [vmem:[#allocation2 + $0x58] sm:$0xff]  ;;  %vm3666_vm4 = vcmp.le.s32.totalorder %v319_v35, 14 }
  0x21   : > { %253 = vst.msk [vmem:[#allocation2 + $0x68] sm:$0xff] %vm236_vm2, %v3420_v45  ;;  %v912_v2 = vld [vmem:[#allocation2 + $0x60] sm:$0xff] }
  0x22   : > { %3255 = vmatmul.msk.bf16.vlgmr.msra.gmra.mxu3 %vm236_vm2, %v945_v52  ;;  %254 = vst.msk [vmem:[#allocation2 + $0x70] sm:$0xff] %vm236_vm2, %v3421_v48  ;;  %v919_v9 = vld [vmem:[#allocation2 + $0x98] sm:$0xff]  ;;  %v3618_v12 = vpack.c.bf16 %v912_v2, %v911_v1 }
  0x23   : > { %261 = vst.msk [vmem:[#allocation2 + $0xa8] sm:$0xff] %vm236_vm2, %v3436_v51  ;;  %v920_v10 = vld [vmem:[#allocation2 + $0xa0] sm:$0xff] }
  0x24   : > { %262 = vst.msk [vmem:[#allocation2 + $0xb0] sm:$0xff] %vm236_vm2, %v3437_v53  ;;  %v927_v14 = vld [vmem:[#allocation2 + $0xd8] sm:$0xff]  ;;  %v3624_v17 = vpack.c.bf16 %v920_v10, %v919_v9  ;;  %v3343_v53 = vld [vmem:[%s4612_s1 + $0xc] sm:$0x3] }
  0x25   : > { %269 = vst.msk [vmem:[#allocation2 + $0xe8] sm:$0xff] %vm236_vm2, %v3452_v55  ;;  %v928_v15 = vld [vmem:[#allocation2 + $0xe0] sm:$0xff]  ;;  %v2414_v57 = vand.u32 %v3343_v53, %v3536_v4 }
  0x26   : > { %v903_v62 = vld [vmem:[#allocation2 + $0x18] sm:$0xff]  ;;  %270 = vst.msk [vmem:[#allocation2 + $0xf0] sm:$0xff] %vm236_vm2, %v3453_v56  ;;  %v946_v19 = vpack.c.bf16 %v928_v15, %v927_v14  ;;  %v756_v10 = vld [vmem:[#allocation2 + $0x7] sm:$0xff] }
  0x27   : > { %v904_v3 = vld [vmem:[#allocation2 + $0x20] sm:$0xff]  ;;  %245 = vst.msk [vmem:[#allocation2 + $0x28] sm:$0xff] %vm236_vm2, %v3404_v58  ;;  %v2636_v58 = vand.u32 %v3360_v54, %v3536_v4  ;;  %2423 = vmatpush.bf16.msra.mxu2 %v2414_v57  ;;  %v852_v14 = vsel %vm3650_vm3, %v756_v10, 0.0  ;;  %v1553_v15 = vld [vmem:[#allocation2 + $0x17] sm:$0xff] }
  0x28   : > { %v3613_v6 = vpack.c.bf16 %v904_v3, %v903_v62  ;;  %246 = vst.msk [vmem:[#allocation2 + $0x30] sm:$0xff] %vm236_vm2, %v3405_v59  ;;  %v913_v25 = vld [vmem:[#allocation2 + $0x68] sm:$0xff]  ;;  %v2029_v47 = vld [vmem:[#allocation2 + $0x19] sm:$0xff] }
  0x29   : > { %255 = vst.msk [vmem:[#allocation2 + $0x78] sm:$0xff] %vm236_vm2, %v3424_v60  ;;  %v914_v26 = vld [vmem:[#allocation2 + $0x70] sm:$0xff]  ;;  %v3326_v59 = vld [vmem:[%s4612_s1 + $0xa] sm:$0x3]  ;;  %2645 = vmatpush.bf16.msra.mxu3 %v2636_v58  ;;  %v1554_v20 = vld [vmem:[#allocation2 + $0x1f] sm:$0xff] }
  0x2a   : > { %3244 = vmatmul.msk.bf16.gmra.mxu0 %vm236_vm2, %v3613_v6  ;;  %256 = vst.msk [vmem:[#allocation2 + $0x80] sm:$0xff] %vm236_vm2, %v3425_v63  ;;  %v921_v27 = vld [vmem:[#allocation2 + $0xa8] sm:$0xff]  ;;  %v3640_v29 = vpack.c.bf16 %v914_v26, %v913_v25  ;;  %v3377_v60 = vld [vmem:[%s4612_s1 + $0x10] sm:$0x3]  ;;  %v2160_v61 = vand.u32 %v3326_v59, %v3536_v4  ;;  %v278_v25 = vadd.s32 16, %v3638_v24 }
  0x2b   : > { %263 = vst.msk [vmem:[#allocation2 + $0xb8] sm:$0xff] %vm236_vm2, %v3440_v5  ;;  %v922_v28 = vld [vmem:[#allocation2 + $0xb0] sm:$0xff]  ;;  %v2890_v62 = vand.u32 %v3377_v60, %v3536_v4 }
  0x2c   : > { %264 = vst.msk [vmem:[#allocation2 + $0xc0] sm:$0xff] %vm236_vm2, %v3441_v7  ;;  %v929_v32 = vld [vmem:[#allocation2 + $0xe8] sm:$0xff]  ;;  %v3646_v34 = vpack.c.bf16 %v922_v28, %v921_v27  ;;  %2169 = vmatpush.bf16.msra.mxu1 %v2160_v61  ;;  %v279_v27 = vadd.s32 24, %v3638_v24  ;;  %v326_v28 = vand.u32 15, %v278_v25 }
  0x2d   : > { %271 = vst.msk [vmem:[#allocation2 + $0xf8] sm:$0xff] %vm236_vm2, %v3456_v11  ;;  %v930_v33 = vld [vmem:[#allocation2 + $0xf0] sm:$0xff]  ;;  %2899 = vmatpush.bf16.msra.mxu0 %v2890_v62 }
  0x2e   : > { %3248 = vmatmul.msk.bf16.gmra.mxu1 %vm236_vm2, %v3618_v12  ;;  %272 = vst.msk [vmem:[#allocation2 + $0x100] sm:$0xff] %vm236_vm2, %v3457_v13  ;;  %v905_v21 = vld [vmem:[#allocation2 + $0x28] sm:$0xff]  ;;  %v947_v36 = vpack.c.bf16 %v930_v33, %v929_v32  ;;  %v1236_v11 = vld [vmem:[#allocation2 + $0x11] sm:$0xff]  ;;  %v333_v30 = vand.u32 15, %v279_v27  ;;  %vm3727_vm5 = vcmp.ge.s32.totalorder %v326_v28, 1 }
  0x2f   : > { %247 = vst.msk [vmem:[#allocation2 + $0x38] sm:$0xff] %vm236_vm2, %v3408_v16  ;;  %v906_v22 = vld [vmem:[#allocation2 + $0x30] sm:$0xff]  ;;  %v3654_v38 = vld [vmem:[#allocation2 + $0x27] sm:$0xff]  ;;  %v854_v32 = vsel %vm3727_vm5, %v1553_v15, 0.0 }
  0x30   : > { %3252 = vmatmul.msk.bf16.gmra.mxu2 %vm236_vm2, %v3624_v17  ;;  %248 = vst.msk [vmem:[#allocation2 + $0x40] sm:$0xff] %vm236_vm2, %v3409_v18  ;;  %v3636_v23 = vpack.c.bf16 %v906_v22, %v905_v21  ;;  %v3656_v39 = vld [vmem:[#allocation2 + $0x2f] sm:$0xff]  ;;  %v2315_v41 = vsel %vm3650_vm3, %v3654_v38, 0.0  ;;  %v3670_v44 = vld [vmem:[#allocation2 + $0x21] sm:$0xff]  ;;  %v915_v0 = vld [vmem:[#allocation2 + $0x78] sm:$0xff]  ;;  %v1332_v18 = vsel %vm3666_vm4, %v1236_v11, 0.0  ;;  %v885_v35 = vpack.c.bf16 %v1554_v20, %v854_v32 }
  0x31   : > { %v3664_v42 = vpack.c.bf16 %v3656_v39, %v2315_v41  ;;  %v2062_v48 = vsel %vm3666_vm4, %v3670_v44, 0.0  ;;  %v3680_v51 = vld [vmem:[#allocation2 + $0x29] sm:$0xff]  ;;  %v916_v1 = vld [vmem:[#allocation2 + $0x80] sm:$0xff]  ;;  %v1585_v21 = vsel %vm3650_vm3, %v1553_v15, 0.0  ;;  %vm3731_vm6 = vcmp.le.s32.totalorder %v333_v30, 14 }
  0x32   : > { %3256 = vmatmul.msk.bf16.gmra.mxu3 %vm236_vm2, %v946_v19  ;;  %v3678_v50 = vpack.c.bf16 %v2062_v48, %v2029_v47  ;;  %v923_v2 = vld [vmem:[#allocation2 + $0xb8] sm:$0xff]  ;;  %v3704_v5 = vpack.c.bf16 %v916_v1, %v915_v0  ;;  %v757_v13 = vld [vmem:[#allocation2 + $0xf] sm:$0xff]  ;;  %v1617_v26 = vpack.c.bf16 %v1554_v20, %v1585_v21  ;;  %v1334_v33 = vsel %vm3731_vm6, %v3670_v44, 0.0 }
  0x33   : > { %v924_v3 = vld [vmem:[#allocation2 + $0xc0] sm:$0xff]  ;;  %v1235_v16 = vld [vmem:[#allocation2 + $0x9] sm:$0xff]  ;;  %v884_v19 = vpack.c.bf16 %v757_v13, %v852_v14  ;;  %v1364_v37 = vpack.c.bf16 %v1334_v33, %v2029_v47  ;;  %v280_v41 = vadd.s32 32, %v3638_v24  ;;  %v284_v11 = vadd.s32 64, %v3638_v24  ;;  %v3820_v20 = vld [vmem:[#allocation2 + $0x51] sm:$0xff] }
  0x34   : > { %v931_v7 = vld [vmem:[#allocation2 + $0xf8] sm:$0xff]  ;;  %v3707_v9 = vpack.c.bf16 %v924_v3, %v923_v2  ;;  %v1363_v22 = vpack.c.bf16 %v1332_v18, %v1235_v16  ;;  %v285_v14 = vadd.s32 72, %v3638_v24  ;;  %v4687_v18 = vmov 0  ;;  %v3824_v25 = vld [vmem:[#allocation2 + $0x49] sm:$0xff] }
  0x35   : > { %v932_v8 = vld [vmem:[#allocation2 + $0x100] sm:$0xff]  ;;  %v340_v44 = vand.u32 15, %v280_v41  ;;  %v368_v15 = vand.u32 15, %v284_v11  ;;  %v287_v41 = vadd.s32 88, %v3638_v24  ;;  %v289_v11 = vadd.s32 104, %v3638_v24 }
  0x36   : > { %v907_v45 = vld [vmem:[#allocation2 + $0x38] sm:$0xff]  ;;  %v948_v4 = vpack.c.bf16 %v932_v8, %v931_v7  ;;  %v1560_v8 = vld [vmem:[#allocation2 + $0x4f] sm:$0xff]  ;;  %v375_v16 = vand.u32 15, %v285_v14 }
  0x37   : > { %v3675_v49 = vld [vmem:[#allocation2 + $0x31] sm:$0xff]  ;;  %v908_v55 = vld [vmem:[#allocation2 + $0x40] sm:$0xff]  ;;  %vm3751_vm7 = vcmp.ge.s32.totalorder %v340_v44, 1  ;;  %vm3812_vm11 = vcmp.ge.s32.totalorder %v368_v15, 1  ;;  %v403_v14 = vand.u32 15, %v289_v11 }
  0x38   : > { %v2792_v52 = vsel %vm3666_vm4, %v3675_v49, 0.0  ;;  %v936_v63 = vpack.c.bf16 %v908_v55, %v907_v45  ;;  %v281_v45 = vadd.s32 40, %v3638_v24  ;;  %v3762_v53 = vld [vmem:[#allocation2 + $0x37] sm:$0xff]  ;;  %v3769_v57 = vld [vmem:[#allocation2 + $0x3f] sm:$0xff]  ;;  %v1559_v1 = vld [vmem:[#allocation2 + $0x47] sm:$0xff]  ;;  %v4688_v18 = vsel %vm3812_vm11, 4294967295, %v4687_v18 }
  0x39   : > { %v3692_v56 = vpack.c.bf16 %v2792_v52, %v3680_v51  ;;  %v856_v52 = vsel %vm3751_vm7, %v3654_v38, 0.0  ;;  %v1589_v58 = vsel %vm3751_vm7, %v3762_v53, 0.0  ;;  %v3794_v2 = vld [vmem:[#allocation2 + $0x39] sm:$0xff]  ;;  %4689 = vst [vmem:[#allocation3_spill] sm:$0xff] %v4688_v18  ;;  %vm3816_vm12 = vcmp.le.s32.totalorder %v375_v16, 14 }
  0x3a   : > { %3245 = vmatmul.msk.bf16.gmra.mxu0 %vm236_vm2, %v3636_v23  ;;  %v347_v48 = vand.u32 15, %v281_v45  ;;  %v886_v55 = vpack.c.bf16 %v3656_v39, %v856_v52  ;;  %v1619_v60 = vpack.c.bf16 %v3769_v57, %v1589_v58  ;;  %v860_v21 = vsel %vm3812_vm11, %v1559_v1, 0.0  ;;  %v1562_v30 = vld [vmem:[#allocation2 + $0x5f] sm:$0xff] }
  0x3b   : > { %v888_v27 = vpack.c.bf16 %v1560_v8, %v860_v21  ;;  %v4700_v21 = vmov 0  ;;  %vm3896_vm0 = vcmp.le.s32.totalorder %v403_v14, 14  ;;  %v4709_v14 = vmov 0 }
  0x3c   : > { %vm3755_vm8 = vcmp.le.s32.totalorder %v347_v48, 14  ;;  %v4692_v48 = vmov 0  ;;  %v294_v18 = vadd.s32 144, %v3638_v24 }
  0x3d   : > { %v1336_v54 = vsel %vm3755_vm8, %v3675_v49, 0.0  ;;  %v283_v49 = vadd.s32 56, %v3638_v24 }
  0x3e   : > { %3249 = vmatmul.msk.bf16.gmra.mxu1 %vm236_vm2, %v3640_v29  ;;  %v1365_v59 = vpack.c.bf16 %v1336_v54, %v3680_v51  ;;  %v4696_v54 = vmov 0 }
  0x3f   : > { %v361_v61 = vand.u32 15, %v283_v49 }
  0x40   : > { %3253 = vmatmul.msk.bf16.gmra.mxu2 %vm236_vm2, %v3646_v34 }
  0x41   : > { %vm3785_vm10 = vcmp.le.s32.totalorder %v361_v61, 14 }
  0x42   : > { %3257 = vmatmul.msk.bf16.gmra.mxu3 %vm236_vm2, %v947_v36  ;;  %v1587_v36 = vsel %vm3727_vm5, %v3654_v38, 0.0  ;;  %v282_v38 = vadd.s32 48, %v3638_v24 }
  0x43   : > { %v1618_v43 = vpack.c.bf16 %v3656_v39, %v1587_v36 }
  0x44   : > { %v354_v39 = vand.u32 15, %v282_v38  ;;  %v1563_v38 = vld [vmem:[#allocation2 + $0x67] sm:$0xff] }
  0x46   : > { %vm3781_vm9 = vcmp.ge.s32.totalorder %v354_v39, 1 }
  0x47   : > { %v858_v0 = vsel %vm3781_vm9, %v3762_v53, 0.0 }
  0x48   : > { %v887_v7 = vpack.c.bf16 %v3769_v57, %v858_v0 }
  0x4a   : > { %3246 = vmatmul.msk.bf16.gmra.mxu0 %vm236_vm2, %v936_v63 }
  0x4e   : > { %3250 = vmatmul.msk.bf16.gmra.mxu1 %vm236_vm2, %v3704_v5 }
  0x50   : > { %3254 = vmatmul.msk.bf16.gmra.mxu2 %vm236_vm2, %v3707_v9 }
  0x52   : > { %3258 = vmatmul.msk.bf16.gmra.mxu3 %vm236_vm2, %v948_v4  ;;  %v1591_v4 = vsel %vm3781_vm9, %v1559_v1, 0.0  ;;  %v1564_v1 = vld [vmem:[#allocation2 + $0x6f] sm:$0xff] }
  0x53   : > { %v1620_v13 = vpack.c.bf16 %v1560_v8, %v1591_v4  ;;  %v288_v8 = vadd.s32 96, %v3638_v24 }
  0x5a   : > { %3310 = vmatmul.msk.bf16.vlgmr.msrb.gmra.mxu0 %vm236_vm2, %v3613_v6 }
  0x5e   : > { %3259 = vmatmul.msk.bf16.vlgmr.msrb.gmra.mxu1 %vm236_vm2, %v884_v19 }
  0x60   : > { %3276 = vmatmul.msk.bf16.vlgmr.msrb.gmra.mxu2 %vm236_vm2, %v1363_v22  ;;  %v1561_v22 = vld [vmem:[#allocation2 + $0x57] sm:$0xff] }
  0x61   : > { %v1593_v32 = vsel %vm3812_vm11, %v1561_v22, 0.0 }
  0x62   : > { %3293 = vmatmul.msk.bf16.vlgmr.msrb.gmra.mxu3 %vm236_vm2, %v1617_v26  ;;  %v1340_v26 = vsel %vm3816_vm12, %v3820_v20, 0.0 }
  0x63   : > { %v1367_v33 = vpack.c.bf16 %v1340_v26, %v3824_v25  ;;  %v4704_v26 = vmov 0 }
  0x64   : > { %v4705_v26 = vsel %vm3896_vm0, 4294967295, %v4704_v26 }
  0x65   : > { %4706 = vst [vmem:[#allocation10_spill] sm:$0xff] %v4705_v26  ;;  %v292_v26 = vadd.s32 128, %v3638_v24 }
  0x6a   : > { %3311 = vmatmul.msk.bf16.gmra.mxu0 %vm236_vm2, %v3636_v23 }
  0x6e   : > { %3260 = vmatmul.msk.bf16.gmra.mxu1 %vm236_vm2, %v885_v35  ;;  %v286_v35 = vadd.s32 80, %v3638_v24 }
  0x70   : > { %3277 = vmatmul.msk.bf16.gmra.mxu2 %vm236_vm2, %v1364_v37  ;;  %v1621_v37 = vpack.c.bf16 %v1562_v30, %v1593_v32 }
  0x72   : > { %3294 = vmatmul.msk.bf16.gmra.mxu3 %vm236_vm2, %v1618_v43  ;;  %v389_v43 = vand.u32 15, %v287_v41 }
  0x74   : > { %vm3853_vm14 = vcmp.le.s32.totalorder %v389_v43, 14 }
  0x75   : > { %v4697_v54 = vsel %vm3853_vm14, 4294967295, %v4696_v54 }
  0x76   : > { %4698 = vst [vmem:[#allocation6_spill] sm:$0xff] %v4697_v54  ;;  %v1570_v54 = vld [vmem:[#allocation2 + $0x9f] sm:$0xff] }
  0x7a   : > { %3312 = vmatmul.msk.bf16.gmra.mxu0 %vm236_vm2, %v936_v63  ;;  %v3789_v63 = vld [vmem:[#allocation2 + $0x41] sm:$0xff] }
  0x7b   : > { %v1338_v3 = vsel %vm3785_vm10, %v3789_v63, 0.0 }
  0x7c   : > { %v1366_v10 = vpack.c.bf16 %v1338_v3, %v3794_v2 }
  0x7e   : > { %3261 = vmatmul.msk.bf16.gmra.mxu1 %vm236_vm2, %v886_v55  ;;  %v3857_v55 = vld [vmem:[#allocation2 + $0x61] sm:$0xff] }
  0x7f   : > { %v1342_v49 = vsel %vm3853_vm14, %v3857_v55, 0.0 }
  0x80   : > { %3278 = vmatmul.msk.bf16.gmra.mxu2 %vm236_vm2, %v1365_v59 }
  0x82   : > { %3295 = vmatmul.msk.bf16.gmra.mxu3 %vm236_vm2, %v1619_v60  ;;  %v3863_v60 = vld [vmem:[#allocation2 + $0x59] sm:$0xff] }
  0x8a   : > { %3313 = vmatmul.msk.bf16.gmra.mxu0 %vm236_vm2, %v3586_v40 }
  0x8e   : > { %3262 = vmatmul.msk.bf16.gmra.mxu1 %vm236_vm2, %v887_v7  ;;  %v1368_v7 = vpack.c.bf16 %v1342_v49, %v3863_v60 }
  0x90   : > { %3279 = vmatmul.msk.bf16.gmra.mxu2 %vm236_vm2, %v1366_v10 }
  0x92   : > { %3296 = vmatmul.msk.bf16.gmra.mxu3 %vm236_vm2, %v1620_v13  ;;  %v396_v13 = vand.u32 15, %v288_v8 }
  0x94   : > { %vm3890_vm15 = vcmp.ge.s32.totalorder %v396_v13, 1 }
  0x95   : > { %v3810_v40 = vpop.f32.mrf.mxu0  ;;  %v4701_v21 = vsel %vm3890_vm15, 4294967295, %v4700_v21  ;;  %v864_v32 = vsel %vm3890_vm15, %v1563_v38, 0.0 }
  0x96   : > { %4702 = vst [vmem:[#allocation8_spill] sm:$0xff] %v4701_v21  ;;  %v890_v41 = vpack.c.bf16 %v1564_v1, %v864_v32 }
  0x9a   : > { %3314 = vmatmul.msk.bf16.gmra.mxu0 %vm236_vm2, %v3618_v12  ;;  %v382_v12 = vand.u32 15, %v286_v35  ;;  %v3906_v35 = vld [vmem:[#allocation2 + $0x69] sm:$0xff] }
  0x9b   : > { %v3831_v28 = vpop.f32.mrf.mxu1  ;;  %4707 = vst [vmem:[#allocation11_spill] sm:$0xff] %v3906_v35 }
  0x9c   : > { %vm3847_vm13 = vcmp.ge.s32.totalorder %v382_v12, 1 }
  0x9d   : > { %v3837_v36 = vpop.f32.mrf.mxu0  ;;  %v4693_v48 = vsel %vm3847_vm13, 4294967295, %v4692_v48  ;;  %v862_v59 = vsel %vm3847_vm13, %v1561_v22, 0.0  ;;  %v1595_v3 = vsel %vm3847_vm13, %v1563_v38, 0.0 }
  0x9e   : > { %3263 = vmatmul.msk.bf16.gmra.mxu1 %vm236_vm2, %v888_v27  ;;  %4694 = vst [vmem:[#allocation4_spill] sm:$0xff] %v4693_v48  ;;  %v889_v39 = vpack.c.bf16 %v1562_v30, %v862_v59  ;;  %v1622_v10 = vpack.c.bf16 %v1564_v1, %v1595_v3  ;;  %v3900_v27 = vld [vmem:[#allocation2 + $0x71] sm:$0xff]  ;;  %v1566_v59 = vld [vmem:[#allocation2 + $0x7f] sm:$0xff]  ;;  %v4719_v48 = vmov 0 }
  0xa0   : > { %3280 = vmatmul.msk.bf16.gmra.mxu2 %vm236_vm2, %v1367_v33  ;;  %v1565_v33 = vld [vmem:[#allocation2 + $0x77] sm:$0xff] }
  0xa1   : > { %v1597_v49 = vsel %vm3890_vm15, %v1565_v33, 0.0 }
  0xa2   : > { %3297 = vmatmul.msk.bf16.gmra.mxu3 %vm236_vm2, %v1621_v37  ;;  %v1344_v37 = vsel %vm3896_vm0, %v3900_v27, 0.0  ;;  %v1623_v1 = vpack.c.bf16 %v1566_v59, %v1597_v49 }
  0xa3   : > { %v3843_v45 = vpop.f32.mrf.mxu2  ;;  %v3845_v44 = vpop.f32.mrf.mxu1  ;;  %v1369_v38 = vpack.c.bf16 %v1344_v37, %v3906_v35  ;;  %v4713_v37 = vmov 0 }
  0xa5   : > { %v3851_v52 = vpop.f32.mrf.mxu3 }
  0xa6   : > { %4695 = vst [vmem:[#allocation5_spill] sm:$0xff] %v3851_v52 }
  0xa7   : > { %v3859_v58 = vpop.f32.mrf.mxu0 }
  0xaa   : > { %3315 = vmatmul.msk.bf16.gmra.mxu0 %vm236_vm2, %v3640_v29 }
  0xab   : > { %v3870_v61 = vpop.f32.mrf.mxu2  ;;  %v3872_v0 = vpop.f32.mrf.mxu1 }
  0xad   : > { %v3878_v4 = vpop.f32.mrf.mxu3 }
  0xae   : > { %4699 = vst [vmem:[#allocation7_spill] sm:$0xff] %v3878_v4  ;;  %3264 = vmatmul.msk.bf16.gmra.mxu1 %vm236_vm2, %v889_v39  ;;  %v290_v39 = vadd.s32 112, %v3638_v24 }
  0xaf   : > { %v3882_v29 = vpop.f32.mrf.mxu0 }
  0xb0   : > { %3281 = vmatmul.msk.bf16.gmra.mxu2 %vm236_vm2, %v1368_v7  ;;  %v291_v7 = vadd.s32 120, %v3638_v24  ;;  %v410_v8 = vand.u32 15, %v290_v39  ;;  %v1567_v39 = vld [vmem:[#allocation2 + $0x87] sm:$0xff] }
  0xb2   : > { %3298 = vmatmul.msk.bf16.gmra.mxu3 %vm236_vm2, %v1622_v10  ;;  %v417_v10 = vand.u32 15, %v291_v7  ;;  %vm3933_vm1 = vcmp.ge.s32.totalorder %v410_v8, 1 }
  0xb3   : > { %v3886_v15 = vpop.f32.mrf.mxu2  ;;  %v3888_v16 = vpop.f32.mrf.mxu1  ;;  %v4710_v14 = vsel %vm3933_vm1, 4294967295, %v4709_v14  ;;  %v1599_v21 = vsel %vm3933_vm1, %v1567_v39, 0.0 }
  0xb4   : > { %4711 = vst [vmem:[#allocation13_spill] sm:$0xff] %v4710_v14  ;;  %vm3939_vm3 = vcmp.le.s32.totalorder %v417_v10, 14 }
  0xb5   : > { %v3894_v22 = vpop.f32.mrf.mxu3  ;;  %v4714_v37 = vsel %vm3939_vm3, 4294967295, %v4713_v37 }
  0xb6   : > { %4703 = vst [vmem:[#allocation9_spill] sm:$0xff] %v3894_v22 }
  0xb7   : > { %v3902_v30 = vpop.f32.mrf.mxu0  ;;  %4715 = vst [vmem:[#allocation15_spill] sm:$0xff] %v4714_v37  ;;  %v424_v37 = vand.u32 15, %v292_v26 }
  0xb9   : > { %vm3976_vm4 = vcmp.ge.s32.totalorder %v424_v37, 1 }
  0xba   : > { %3316 = vmatmul.msk.bf16.gmra.mxu0 %vm236_vm2, %v3704_v5  ;;  %v4720_v48 = vsel %vm3976_vm4, 4294967295, %v4719_v48 }
  0xbb   : > { %v3913_v12 = vpop.f32.mrf.mxu2  ;;  %v3915_v43 = vpop.f32.mrf.mxu1  ;;  %4721 = vst [vmem:[#allocation19_spill] sm:$0xff] %v4720_v48 }
  0xbd   : > { %v3921_v3 = vpop.f32.mrf.mxu3 }
  0xbe   : > { %4708 = vst [vmem:[#allocation12_spill] sm:$0xff] %v3921_v3  ;;  %3265 = vmatmul.msk.bf16.gmra.mxu1 %vm236_vm2, %v890_v41  ;;  %v3943_v41 = vld [vmem:[#allocation2 + $0x81] sm:$0xff]  ;;  %v1568_v3 = vld [vmem:[#allocation2 + $0x8f] sm:$0xff] }
  0xbf   : > { %v3925_v5 = vpop.f32.mrf.mxu0  ;;  %4716 = vst [vmem:[#allocation16_spill] sm:$0xff] %v3943_v41  ;;  %v1346_v7 = vsel %vm3939_vm3, %v3943_v41, 0.0 }
  0xc0   : > { %3282 = vmatmul.msk.bf16.gmra.mxu2 %vm236_vm2, %v1369_v38  ;;  %v866_v38 = vsel %vm3933_vm1, %v1565_v33, 0.0 }
  0xc1   : > { %v891_v8 = vpack.c.bf16 %v1566_v59, %v866_v38  ;;  %v1624_v59 = vpack.c.bf16 %v1568_v3, %v1599_v21  ;;  %v293_v38 = vadd.s32 136, %v3638_v24  ;;  %v4723_v21 = vmov 0 }
  0xc2   : > { %3299 = vmatmul.msk.bf16.gmra.mxu3 %vm236_vm2, %v1623_v1  ;;  %v3949_v1 = vld [vmem:[#allocation2 + $0x79] sm:$0xff] }
  0xc3   : > { %v3929_v11 = vpop.f32.mrf.mxu2  ;;  %v3931_v13 = vpop.f32.mrf.mxu1  ;;  %4717 = vst [vmem:[#allocation17_spill] sm:$0xff] %v3949_v1  ;;  %v1370_v33 = vpack.c.bf16 %v1346_v7, %v3949_v1  ;;  %v431_v14 = vand.u32 15, %v293_v38  ;;  %v3990_v38 = vld [vmem:[#allocation2 + $0x89] sm:$0xff] }
  0xc4   : > { %4727 = vst [vmem:[#allocation23_spill] sm:$0xff] %v3990_v38 }
  0xc5   : > { %v3937_v32 = vpop.f32.mrf.mxu3  ;;  %vm3982_vm1 = vcmp.le.s32.totalorder %v431_v14, 14 }
  0xc6   : > { %4712 = vst [vmem:[#allocation14_spill] sm:$0xff] %v3937_v32  ;;  %v4724_v21 = vsel %vm3982_vm1, 4294967295, %v4723_v21 }
  0xc7   : > { %v3945_v49 = vpop.f32.mrf.mxu0  ;;  %4725 = vst [vmem:[#allocation21_spill] sm:$0xff] %v4724_v21  ;;  %v438_v21 = vand.u32 15, %v294_v18 }
  0xca   : > { %3317 = vmatmul.msk.bf16.gmra.mxu0 %vm236_vm2, %v3593_v46 }
  0xcb   : > { %v3956_v10 = vpop.f32.mrf.mxu2  ;;  %v3958_v32 = vpop.f32.mrf.mxu1 }
  0xcd   : > { %v3964_v22 = vpop.f32.mrf.mxu3 }
  0xce   : > { %4718 = vst [vmem:[#allocation18_spill] sm:$0xff] %v3964_v22  ;;  %3266 = vmatmul.msk.bf16.gmra.mxu1 %vm236_vm2, %v891_v8  ;;  %v3986_v22 = vld [vmem:[#allocation2 + $0x91] sm:$0xff] }
  0xcf   : > { %v3968_v46 = vpop.f32.mrf.mxu0  ;;  %4726 = vst [vmem:[#allocation22_spill] sm:$0xff] %v3986_v22  ;;  %v1348_v37 = vsel %vm3982_vm1, %v3986_v22, 0.0 }
  0xd0   : > { %3283 = vmatmul.msk.bf16.gmra.mxu2 %vm236_vm2, %v1370_v33  ;;  %v868_v33 = vsel %vm3976_vm4, %v1567_v39, 0.0  ;;  %v1371_v52 = vpack.c.bf16 %v1348_v37, %v3990_v38  ;;  %v4730_v38 = vmov 0 }
  0xd1   : > { %v892_v1 = vpack.c.bf16 %v1568_v3, %v868_v33 }
  0xd2   : > { %3300 = vmatmul.msk.bf16.gmra.mxu3 %vm236_vm2, %v1624_v59  ;;  %v1569_v59 = vld [vmem:[#allocation2 + $0x97] sm:$0xff] }
  0xd3   : > { %v3972_v4 = vpop.f32.mrf.mxu2  ;;  %v3974_v7 = vpop.f32.mrf.mxu1  ;;  %v1601_v41 = vsel %vm3976_vm4, %v1569_v59, 0.0  ;;  %vm4011_vm4 = vcmp.ge.s32.totalorder %v438_v21, 1 }
  0xd4   : > { %v1625_v3 = vpack.c.bf16 %v1570_v54, %v1601_v41  ;;  %v4731_v38 = vsel %vm4011_vm4, 4294967295, %v4730_v38 }
  0xd5   : > { %v3980_v8 = vpop.f32.mrf.mxu3  ;;  %4732 = vst [vmem:[#allocation26_spill] sm:$0xff] %v4731_v38 }
  0xd6   : > { %4722 = vst [vmem:[#allocation20_spill] sm:$0xff] %v3980_v8 }
  0xd7   : > { %v1917_v26 = vpop.f32.mrf.mxu0 }
  0xda   : > { %3318 = vmatmul.msk.bf16.gmra.mxu0 %vm236_vm2, %v3624_v17  ;;  %v295_v17 = vadd.s32 152, %v3638_v24 }
  0xdb   : > { %v3997_v14 = vpop.f32.mrf.mxu2  ;;  %v1155_v8 = vpop.f32.mrf.mxu1 }
  0xdc   : > { %4728 = vst [vmem:[#allocation24_spill] sm:$0xff] %v3997_v14  ;;  %v1156_v39 = vadd.f32 %v1155_v8, %v3810_v40  ;;  %v445_v48 = vand.u32 15, %v295_v17  ;;  %v1571_v17 = vld [vmem:[#allocation2 + $0xa7] sm:$0xff] }
  0xdd   : > { %v4004_v35 = vpop.f32.mrf.mxu3 }
  0xde   : > { %4729 = vst [vmem:[#allocation25_spill] sm:$0xff] %v4004_v35  ;;  %3267 = vmatmul.msk.bf16.gmra.mxu1 %vm236_vm2, %v892_v1  ;;  %vm4015_vm1 = vcmp.le.s32.totalorder %v445_v48, 14  ;;  %v4733_v35 = vmov 0 }
  0xdf   : > { %v1919_v33 = vpop.f32.mrf.mxu0  ;;  %v4734_v35 = vsel %vm4015_vm1, 4294967295, %v4733_v35 }
  0xe0   : > { %3284 = vmatmul.msk.bf16.gmra.mxu2 %vm236_vm2, %v1371_v52  ;;  %4735 = vst [vmem:[#allocation27_spill] sm:$0xff] %v4734_v35  ;;  %v4019_v52 = vld [vmem:[#allocation2 + $0xa1] sm:$0xff] }
  0xe1   : > { %4736 = vst [vmem:[#allocation28_spill] sm:$0xff] %v4019_v52  ;;  %v1350_v21 = vsel %vm4015_vm1, %v4019_v52, 0.0 }
  0xe2   : > { %3301 = vmatmul.msk.bf16.gmra.mxu3 %vm236_vm2, %v1625_v3  ;;  %v870_v3 = vsel %vm4011_vm4, %v1569_v59, 0.0 }
  0xe3   : > { %v1441_v22 = vpop.f32.mrf.mxu2  ;;  %v1157_v40 = vpop.f32.mrf.mxu1 }
  0xe4   : > { %v1521_v8 = vadd.f32 %v1441_v22, %v1156_v39  ;;  %v1158_v37 = vadd.f32 %v1157_v40, %v3837_v36  ;;  %v4025_v36 = vld [vmem:[#allocation2 + $0x99] sm:$0xff]  ;;  %v893_v39 = vpack.c.bf16 %v1570_v54, %v870_v3 }
  0xe5   : > { %v1695_v1 = vpop.f32.mrf.mxu3 }
  0xe6   : > { %v1775_v41 = vadd.f32 %v1695_v1, %v1521_v8  ;;  %v1572_v8 = vld [vmem:[#allocation2 + $0xaf] sm:$0xff]  ;;  %v1603_v1 = vsel %vm4011_vm4, %v1571_v17, 0.0 }
  0xe7   : > { %v1922_v18 = vpop.f32.mrf.mxu0  ;;  %v1626_v54 = vpack.c.bf16 %v1572_v8, %v1603_v1 }
  0xe8   : > { %v4023_v22 = vadd.f32 %v1917_v26, %v1775_v41  ;;  %v1372_v41 = vpack.c.bf16 %v1350_v21, %v4025_v36 }
  0xea   : > { %4737 = vst [vmem:[#allocation29_spill] sm:$0xff] %v4023_v22  ;;  %3319 = vmatmul.msk.bf16.gmra.mxu0 %vm236_vm2, %v3646_v34  ;;  %v296_v22 = vadd.s32 160, %v3638_v24  ;;  %v297_v34 = vadd.s32 168, %v3638_v24 }
  0xeb   : > { %v1443_v48 = vpop.f32.mrf.mxu2  ;;  %v1160_v40 = vpop.f32.mrf.mxu1 }
  0xec   : > { %v1522_v59 = vadd.f32 %v1443_v48, %v1158_v37  ;;  %v1161_v26 = vadd.f32 %v1160_v40, %v3859_v58  ;;  %v452_v52 = vand.u32 15, %v296_v22  ;;  %v459_v58 = vand.u32 15, %v297_v34 }
  0xed   : > { %v1697_v14 = vpop.f32.mrf.mxu3 }
  0xee   : > { %v1776_v35 = vadd.f32 %v1697_v14, %v1522_v59  ;;  %3268 = vmatmul.msk.bf16.gmra.mxu1 %vm236_vm2, %v893_v39  ;;  %vm4044_vm4 = vcmp.ge.s32.totalorder %v452_v52, 1  ;;  %v4739_v14 = vmov 0  ;;  %vm4048_vm1 = vcmp.le.s32.totalorder %v459_v58, 14 }
  0xef   : > { %v1924_v3 = vpop.f32.mrf.mxu0  ;;  %v4740_v14 = vsel %vm4044_vm4, 4294967295, %v4739_v14  ;;  %v4742_v59 = vmov 0  ;;  %v872_v22 = vsel %vm4044_vm4, %v1571_v17, 0.0 }
  0xf0   : > { %3285 = vmatmul.msk.bf16.gmra.mxu2 %vm236_vm2, %v1372_v41  ;;  %v4040_v38 = vadd.f32 %v1919_v33, %v1776_v35  ;;  %4741 = vst [vmem:[#allocation31_spill] sm:$0xff] %v4740_v14  ;;  %v4743_v59 = vsel %vm4048_vm1, 4294967295, %v4742_v59  ;;  %v4052_v35 = vld [vmem:[#allocation2 + $0xb1] sm:$0xff] }
  0xf1   : > { %4744 = vst [vmem:[#allocation32_spill] sm:$0xff] %v4743_v59  ;;  %v1573_v41 = vld [vmem:[#allocation2 + $0xb7] sm:$0xff]  ;;  %v1352_v52 = vsel %vm4048_vm1, %v4052_v35, 0.0 }
  0xf2   : > { %4738 = vst [vmem:[#allocation30_spill] sm:$0xff] %v4040_v38  ;;  %3302 = vmatmul.msk.bf16.gmra.mxu3 %vm236_vm2, %v1626_v54  ;;  %v894_v54 = vpack.c.bf16 %v1572_v8, %v872_v22 }
  0xf3   : > { %v1446_v37 = vpop.f32.mrf.mxu2  ;;  %v1162_v21 = vpop.f32.mrf.mxu1 }
  0xf4   : > { %v1523_v48 = vadd.f32 %v1446_v37, %v1161_v26  ;;  %v1163_v40 = vadd.f32 %v1162_v21, %v3882_v29  ;;  %v4058_v29 = vld [vmem:[#allocation2 + $0xa9] sm:$0xff]  ;;  %v1574_v37 = vld [vmem:[#allocation2 + $0xbf] sm:$0xff]  ;;  %v1605_v21 = vsel %vm4044_vm4, %v1573_v41, 0.0 }
  0xf5   : > { %v1700_v39 = vpop.f32.mrf.mxu3  ;;  %v1627_v8 = vpack.c.bf16 %v1574_v37, %v1605_v21 }
  0xf6   : > { %v1777_v1 = vadd.f32 %v1700_v39, %v1523_v48  ;;  %v1373_v48 = vpack.c.bf16 %v1352_v52, %v4058_v29  ;;  %v298_v39 = vadd.s32 176, %v3638_v24 }
  0xf7   : > { %v1927_v33 = vpop.f32.mrf.mxu0 }
  0xf8   : > { %v4056_v26 = vadd.f32 %v1922_v18, %v1777_v1 }
  0xfa   : > { %4745 = vst [vmem:[#allocation33_spill] sm:$0xff] %v4056_v26  ;;  %3320 = vmatmul.msk.bf16.gmra.mxu0 %vm236_vm2, %v3707_v9  ;;  %v299_v9 = vadd.s32 184, %v3638_v24  ;;  %v466_v26 = vand.u32 15, %v298_v39 }
  0xfb   : > { %v1448_v34 = vpop.f32.mrf.mxu2  ;;  %v1165_v58 = vpop.f32.mrf.mxu1 }
  0xfc   : > { %v1524_v17 = vadd.f32 %v1448_v34, %v1163_v40  ;;  %v1166_v18 = vadd.f32 %v1165_v58, %v3902_v30  ;;  %v473_v30 = vand.u32 15, %v299_v9  ;;  %v1829_v34 = vld [vmem:[#allocation2 + $0xc8] sm:$0xff]  ;;  %v1830_v58 = vld [vmem:[#allocation2 + $0xd0] sm:$0xff]  ;;  %vm4077_vm4 = vcmp.ge.s32.totalorder %v466_v26, 1 }
  0xfd   : > { %v1702_v1 = vpop.f32.mrf.mxu3 }
  0xfe   : > { %v1778_v59 = vadd.f32 %v1702_v1, %v1524_v17  ;;  %3269 = vmatmul.msk.bf16.gmra.mxu1 %vm236_vm2, %v894_v54  ;;  %v4747_v54 = vmov 0  ;;  %vm4081_vm1 = vcmp.le.s32.totalorder %v473_v30, 14 }
  0xff   : > { %v1929_v22 = vpop.f32.mrf.mxu0  ;;  %v4748_v54 = vsel %vm4077_vm4, 4294967295, %v4747_v54 }
 0x100   : > { %3286 = vmatmul.msk.bf16.gmra.mxu2 %vm236_vm2, %v1373_v48  ;;  %v4073_v14 = vadd.f32 %v1924_v3, %v1778_v59  ;;  %4749 = vst [vmem:[#allocation35_spill] sm:$0xff] %v4748_v54  ;;  %v4750_v48 = vmov 0  ;;  %v4085_v3 = vld [vmem:[#allocation2 + $0xc1] sm:$0xff]  ;;  %v1850_v59 = vpack.c.bf16 %v1830_v58, %v1829_v34 }
 0x101   : > { %v4751_v48 = vsel %vm4081_vm1, 4294967295, %v4750_v48 }
 0x102   : > { %4746 = vst [vmem:[#allocation34_spill] sm:$0xff] %v4073_v14  ;;  %3303 = vmatmul.msk.bf16.gmra.mxu3 %vm236_vm2, %v1627_v8  ;;  %v874_v8 = vsel %vm4077_vm4, %v1573_v41, 0.0 }
 0x103   : > { %v1451_v40 = vpop.f32.mrf.mxu2  ;;  %v1167_v52 = vpop.f32.mrf.mxu1  ;;  %4752 = vst [vmem:[#allocation36_spill] sm:$0xff] %v4751_v48  ;;  %v895_v26 = vpack.c.bf16 %v1574_v37, %v874_v8 }
 0x104   : > { %v1525_v38 = vadd.f32 %v1451_v40, %v1166_v18  ;;  %v1168_v17 = vadd.f32 %v1167_v52, %v3925_v5  ;;  %v1575_v18 = vld [vmem:[#allocation2 + $0xc7] sm:$0xff]  ;;  %v4091_v5 = vld [vmem:[#allocation2 + $0xb9] sm:$0xff]  ;;  %v1576_v52 = vld [vmem:[#allocation2 + $0xcf] sm:$0xff] }
 0x105   : > { %v1705_v21 = vpop.f32.mrf.mxu3  ;;  %v1607_v34 = vsel %vm4077_vm4, %v1575_v18, 0.0 }
 0x106   : > { %v1779_v1 = vadd.f32 %v1705_v21, %v1525_v38  ;;  %v1354_v38 = vsel %vm4081_vm1, %v4085_v3, 0.0  ;;  %v300_v21 = vadd.s32 192, %v3638_v24  ;;  %v1628_v37 = vpack.c.bf16 %v1576_v52, %v1607_v34 }
 0x107   : > { %v1932_v39 = vpop.f32.mrf.mxu0 }
 0x108   : > { %v4089_v9 = vadd.f32 %v1927_v33, %v1779_v1  ;;  %v1374_v33 = vpack.c.bf16 %v1354_v38, %v4091_v5  ;;  %v480_v48 = vand.u32 15, %v300_v21 }
 0x10a   : > { %4753 = vst [vmem:[#allocation37_spill] sm:$0xff] %v4089_v9  ;;  %3321 = vmatmul.msk.bf16.gmra.mxu0 %vm236_vm2, %v1850_v59  ;;  %v301_v59 = vadd.s32 200, %v3638_v24  ;;  %vm4109_vm4 = vcmp.ge.s32.totalorder %v480_v48, 1 }
 0x10b   : > { %v1453_v30 = vpop.f32.mrf.mxu2  ;;  %v1170_v40 = vpop.f32.mrf.mxu1 }
 0x10c   : > { %v1526_v58 = vadd.f32 %v1453_v30, %v1168_v17  ;;  %v1171_v41 = vadd.f32 %v1170_v40, %v3945_v49  ;;  %v487_v49 = vand.u32 15, %v301_v59  ;;  %v1831_v30 = vld [vmem:[#allocation2 + $0xd8] sm:$0xff]  ;;  %v1832_v40 = vld [vmem:[#allocation2 + $0xe0] sm:$0xff] }
 0x10d   : > { %v1707_v1 = vpop.f32.mrf.mxu3  ;;  %v1577_v59 = vld [vmem:[#allocation2 + $0xd7] sm:$0xff] }
 0x10e   : > { %v1780_v9 = vadd.f32 %v1707_v1, %v1526_v58  ;;  %3270 = vmatmul.msk.bf16.gmra.mxu1 %vm236_vm2, %v895_v26  ;;  %v4755_v26 = vmov 0  ;;  %vm4113_vm1 = vcmp.le.s32.totalorder %v487_v49, 14 }
 0x10f   : > { %v1934_v8 = vpop.f32.mrf.mxu0  ;;  %v4756_v26 = vsel %vm4109_vm4, 4294967295, %v4755_v26 }
 0x110   : > { %3287 = vmatmul.msk.bf16.gmra.mxu2 %vm236_vm2, %v1374_v33  ;;  %v4105_v54 = vadd.f32 %v1929_v22, %v1780_v9  ;;  %4757 = vst [vmem:[#allocation39_spill] sm:$0xff] %v4756_v26  ;;  %v4758_v33 = vmov 0  ;;  %v1260_v22 = vld [vmem:[#allocation2 + $0xd1] sm:$0xff]  ;;  %v1851_v9 = vpack.c.bf16 %v1832_v40, %v1831_v30  ;;  %v1609_v30 = vsel %vm4109_vm4, %v1577_v59, 0.0 }
 0x111   : > { %v4759_v33 = vsel %vm4113_vm1, 4294967295, %v4758_v33  ;;  %v1356_v48 = vsel %vm4113_vm1, %v1260_v22, 0.0 }
 0x112   : > { %4754 = vst [vmem:[#allocation38_spill] sm:$0xff] %v4105_v54  ;;  %3304 = vmatmul.msk.bf16.gmra.mxu3 %vm236_vm2, %v1628_v37  ;;  %v876_v37 = vsel %vm4109_vm4, %v1575_v18, 0.0  ;;  %v302_v18 = vadd.s32 208, %v3638_v24 }
 0x113   : > { %v1456_v17 = vpop.f32.mrf.mxu2  ;;  %v1172_v38 = vpop.f32.mrf.mxu1  ;;  %4760 = vst [vmem:[#allocation40_spill] sm:$0xff] %v4759_v33 }
 0x114   : > { %v1527_v14 = vadd.f32 %v1456_v17, %v1171_v41  ;;  %v1173_v58 = vadd.f32 %v1172_v38, %v3968_v46  ;;  %v1259_v46 = vld [vmem:[#allocation2 + $0xc9] sm:$0xff]  ;;  %v896_v17 = vpack.c.bf16 %v1576_v52, %v876_v37  ;;  %v1578_v38 = vld [vmem:[#allocation2 + $0xdf] sm:$0xff]  ;;  %v303_v52 = vadd.s32 216, %v3638_v24 }
 0x115   : > { %v1710_v34 = vpop.f32.mrf.mxu3 }
 0x116   : > { %v1781_v1 = vadd.f32 %v1710_v34, %v1527_v14  ;;  %v1375_v34 = vpack.c.bf16 %v1356_v48, %v1259_v46 }
 0x117   : > { %v1937_v21 = vpop.f32.mrf.mxu0 }
 0x118   : > { %v4119_v41 = vadd.f32 %v1932_v39, %v1781_v1  ;;  %v1629_v1 = vpack.c.bf16 %v1578_v38, %v1609_v30  ;;  %v4762_v30 = vmov 0 }
 0x11a   : > { %3322 = vmatmul.msk.bf16.gmra.mxu0 %vm236_vm2, %v1851_v9  ;;  %v494_v9 = vand.u32 15, %v302_v18 }
 0x11b   : > { %v1458_v14 = vpop.f32.mrf.mxu2  ;;  %v1175_v49 = vpop.f32.mrf.mxu1 }
 0x11c   : > { %v1528_v40 = vadd.f32 %v1458_v14, %v1173_v58  ;;  %v1176_v26 = vadd.f32 %v1175_v49, %v3831_v28  ;;  %v501_v58 = vand.u32 15, %v303_v52  ;;  %v1834_v14 = vld [vmem:[#allocation2 + $0xf0] sm:$0xff]  ;;  %vm4134_vm4 = vcmp.ge.s32.totalorder %v494_v9, 1  ;;  %v1262_v28 = vld [vmem:[#allocation2 + $0xe1] sm:$0xff] }
 0x11d   : > { %v1712_v54 = vpop.f32.mrf.mxu3  ;;  %v4763_v30 = vsel %vm4134_vm4, 4294967295, %v4762_v30  ;;  %v878_v52 = vsel %vm4134_vm4, %v1577_v59, 0.0 }
 0x11e   : > { %v1782_v39 = vadd.f32 %v1712_v54, %v1528_v40  ;;  %3271 = vmatmul.msk.bf16.gmra.mxu1 %vm236_vm2, %v896_v17  ;;  %v1833_v54 = vld [vmem:[#allocation2 + $0xe8] sm:$0xff]  ;;  %4764 = vst [vmem:[#allocation42_spill] sm:$0xff] %v4763_v30  ;;  %v3476_v40 = vld [vmem:[%s3563_s27 + $0x78] sm:$0xff]   ;;  %vm4139_vm1 = vcmp.le.s32.totalorder %v501_v58, 14 }
 0x11f   : > { %v1939_v22 = vpop.f32.mrf.mxu0  ;;  %v1852_v49 = vpack.c.bf16 %v1834_v14, %v1833_v54 }
 0x120   : > { %3288 = vmatmul.msk.bf16.gmra.mxu2 %vm236_vm2, %v1375_v34  ;;  %v4130_v37 = vadd.f32 %v1934_v8, %v1782_v39  ;;  %v3460_v34 = vunpack.c.l.bf16 %v3476_v40  ;;  %v4765_v8 = vmov 0  ;;  %v3461_v39 = vunpack.c.h.bf16 %v3476_v40  ;;  %v1580_v40 = vld [vmem:[#allocation2 + $0xef] sm:$0xff] }
 0x121   : > { %v4766_v8 = vsel %vm4139_vm1, 4294967295, %v4765_v8 }
 0x122   : > { %4761 = vst [vmem:[#allocation41_spill] sm:$0xff] %v4130_v37  ;;  %3305 = vmatmul.msk.bf16.gmra.mxu3 %vm236_vm2, %v1629_v1 }
 0x123   : > { %v1461_v46 = vpop.f32.mrf.mxu2  ;;  %v1177_v48 = vpop.f32.mrf.mxu1  ;;  %273 = vst.msk [vmem:[#allocation2 + $0x108] sm:$0xff] %vm236_vm2, %v3460_v34 }
 0x124   : > { %v1529_v17 = vadd.f32 %v1461_v46, %v1176_v26  ;;  %v1579_v26 = vld [vmem:[#allocation2 + $0xe7] sm:$0xff]  ;;  %274 = vst.msk [vmem:[#allocation2 + $0x110] sm:$0xff] %vm236_vm2, %v3461_v39  ;;  %v1261_v46 = vld [vmem:[#allocation2 + $0xd9] sm:$0xff]  ;;  %v1178_v58 = vadd.f32 %v1177_v48, %v3845_v44  ;;  %v305_v44 = vadd.s32 232, %v3638_v24 }
 0x125   : > { %v1715_v33 = vpop.f32.mrf.mxu3  ;;  %v1611_v59 = vsel %vm4134_vm4, %v1579_v26, 0.0 }
 0x126   : > { %v1783_v18 = vadd.f32 %v1715_v33, %v1529_v17  ;;  %v1358_v33 = vsel %vm4139_vm1, %v1262_v28, 0.0  ;;  %v897_v17 = vpack.c.bf16 %v1578_v38, %v878_v52  ;;  %v1630_v28 = vpack.c.bf16 %v1580_v40, %v1611_v59 }
 0x127   : > { %v1942_v1 = vpop.f32.mrf.mxu0  ;;  %v1376_v37 = vpack.c.bf16 %v1358_v33, %v1261_v46  ;;  %v515_v46 = vand.u32 15, %v305_v44  ;;  %v1263_v44 = vld [vmem:[#allocation2 + $0xe9] sm:$0xff] }
 0x128   : > { %v4147_v9 = vadd.f32 %v1937_v21, %v1783_v18  ;;  %v304_v21 = vadd.s32 224, %v3638_v24 }
 0x129   : > { %vm4167_vm1 = vcmp.le.s32.totalorder %v515_v46, 14 }
 0x12a   : > { %3323 = vmatmul.msk.bf16.gmra.mxu0 %vm236_vm2, %v1852_v49  ;;  %v508_v48 = vand.u32 15, %v304_v21 }
 0x12b   : > { %v1463_v54 = vpop.f32.mrf.mxu2  ;;  %v1180_v14 = vpop.f32.mrf.mxu1 }
 0x12c   : > { %v1530_v34 = vadd.f32 %v1463_v54, %v1178_v58  ;;  %v1181_v52 = vadd.f32 %v1180_v14, %v3872_v0  ;;  %v1835_v54 = vld [vmem:[#allocation2 + $0xf8] sm:$0xff]  ;;  %vm4163_vm4 = vcmp.ge.s32.totalorder %v508_v48, 1 }
 0x12d   : > { %v1717_v18 = vpop.f32.mrf.mxu3  ;;  %v880_v21 = vsel %vm4163_vm4, %v1579_v26, 0.0 }
 0x12e   : > { %v1784_v39 = vadd.f32 %v1717_v18, %v1530_v34  ;;  %3272 = vmatmul.msk.bf16.gmra.mxu1 %vm236_vm2, %v897_v17  ;;  %v1836_v34 = vld [vmem:[#allocation2 + $0x100] sm:$0xff]  ;;  %v4767_v17 = vmov 0 }
 0x12f   : > { %v1944_v38 = vpop.f32.mrf.mxu0  ;;  %v4768_v17 = vsel %vm4163_vm4, 4294967295, %v4767_v17  ;;  %v1853_v0 = vpack.c.bf16 %v1836_v34, %v1835_v54 }
 0x130   : > { %3289 = vmatmul.msk.bf16.gmra.mxu2 %vm236_vm2, %v1376_v37  ;;  %v4159_v49 = vadd.f32 %v1939_v22, %v1784_v39  ;;  %v4769_v37 = vmov 0  ;;  %v1264_v22 = vld [vmem:[#allocation2 + $0xf1] sm:$0xff] }
 0x131   : > { %v4770_v37 = vsel %vm4167_vm1, 4294967295, %v4769_v37  ;;  %v1581_v39 = vld [vmem:[#allocation2 + $0xf7] sm:$0xff]  ;;  %v1360_v48 = vsel %vm4167_vm1, %v1264_v22, 0.0 }
 0x132   : > { %3306 = vmatmul.msk.bf16.gmra.mxu3 %vm236_vm2, %v1630_v28  ;;  %v1613_v54 = vsel %vm4163_vm4, %v1581_v39, 0.0  ;;  %v1377_v26 = vpack.c.bf16 %v1360_v48, %v1263_v44 }
 0x133   : > { %v1466_v33 = vpop.f32.mrf.mxu2  ;;  %v1182_v58 = vpop.f32.mrf.mxu1 }
 0x134   : > { %v1531_v18 = vadd.f32 %v1466_v33, %v1181_v52  ;;  %v1183_v52 = vadd.f32 %v1182_v58, %v3888_v16  ;;  %v898_v33 = vpack.c.bf16 %v1580_v40, %v880_v21  ;;  %v307_v16 = vadd.s32 248, %v3638_v24 }
 0x135   : > { %v1720_v59 = vpop.f32.mrf.mxu3 }
 0x136   : > { %v1785_v30 = vadd.f32 %v1720_v59, %v1531_v18  ;;  %v1582_v59 = vld [vmem:[#allocation2 + $0xff] sm:$0xff]  ;;  %v529_v44 = vand.u32 15, %v307_v16 }
 0x137   : > { %v1947_v14 = vpop.f32.mrf.mxu0  ;;  %v1631_v22 = vpack.c.bf16 %v1582_v59, %v1613_v54  ;;  %v1265_v16 = vld [vmem:[#allocation2 + $0xf9] sm:$0xff] }
 0x138   : > { %v4173_v28 = vadd.f32 %v1942_v1, %v1785_v30  ;;  %v306_v30 = vadd.s32 240, %v3638_v24  ;;  %vm4193_vm1 = vcmp.le.s32.totalorder %v529_v44, 14 }
 0x13a   : > { %4771 = vst [vmem:[#allocation43_spill] sm:$0xff] %v4173_v28  ;;  %3324 = vmatmul.msk.bf16.gmra.mxu0 %vm236_vm2, %v1853_v0  ;;  %v522_v58 = vand.u32 15, %v306_v30  ;;  %v1583_v30 = vld [vmem:[#allocation2 + $0x107] sm:$0xff] }
 0x13b   : > { %v1468_v46 = vpop.f32.mrf.mxu2  ;;  %v1185_v18 = vpop.f32.mrf.mxu1 }
 0x13c   : > { %v1532_v34 = vadd.f32 %v1468_v46, %v1183_v52  ;;  %v1186_v21 = vadd.f32 %v1185_v18, %v3915_v43  ;;  %v1837_v46 = vld [vmem:[#allocation2 + $0x108] sm:$0xff]  ;;  %vm4189_vm4 = vcmp.ge.s32.totalorder %v522_v58, 1 }
 0x13d   : > { %v1722_v1 = vpop.f32.mrf.mxu3  ;;  %v882_v18 = vsel %vm4189_vm4, %v1581_v39, 0.0 }
 0x13e   : > { %v1786_v28 = vadd.f32 %v1722_v1, %v1532_v34  ;;  %3273 = vmatmul.msk.bf16.gmra.mxu1 %vm236_vm2, %v898_v33  ;;  %v1838_v34 = vld [vmem:[#allocation2 + $0x110] sm:$0xff] }
 0x13f   : > { %v1949_v40 = vpop.f32.mrf.mxu0  ;;  %v1854_v43 = vpack.c.bf16 %v1838_v34, %v1837_v46  ;;  %v1615_v46 = vsel %vm4189_vm4, %v1583_v30, 0.0 }
 0x140   : > { %3290 = vmatmul.msk.bf16.gmra.mxu2 %vm236_vm2, %v1377_v26  ;;  %v4185_v0 = vadd.f32 %v1944_v38, %v1786_v28  ;;  %v4775_v26 = vmov 0  ;;  %v1266_v38 = vld [vmem:[#allocation2 + $0x101] sm:$0xff] }
 0x141   : > { %v4776_v26 = vsel %vm4193_vm1, 4294967295, %v4775_v26  ;;  %v1362_v58 = vsel %vm4193_vm1, %v1266_v38, 0.0 }
 0x142   : > { %4772 = vst [vmem:[#allocation44_spill] sm:$0xff] %v4185_v0  ;;  %3307 = vmatmul.msk.bf16.gmra.mxu3 %vm236_vm2, %v1631_v22  ;;  %v1378_v39 = vpack.c.bf16 %v1362_v58, %v1265_v16 }
 0x143   : > { %v1471_v48 = vpop.f32.mrf.mxu2  ;;  %v1187_v52 = vpop.f32.mrf.mxu1  ;;  %4777 = vst [vmem:[#allocation45_spill] sm:$0xff] %v4776_v26 }
 0x144   : > { %v1533_v1 = vadd.f32 %v1471_v48, %v1186_v21  ;;  %v1188_v21 = vadd.f32 %v1187_v52, %v3931_v13  ;;  %v899_v48 = vpack.c.bf16 %v1582_v59, %v882_v18 }
 0x145   : > { %v1725_v24 = vpop.f32.mrf.mxu3 }
 0x146   : > { %v1787_v54 = vadd.f32 %v1725_v24, %v1533_v1  ;;  %v1584_v24 = vld [vmem:[#allocation2 + $0x10f] sm:$0xff] }
 0x147   : > { %v1952_v28 = vpop.f32.mrf.mxu0 }
 0x148   : > { %v4199_v22 = vadd.f32 %v1947_v14, %v1787_v54  ;;  %v1632_v54 = vpack.c.bf16 %v1584_v24, %v1615_v46 }
 0x14a   : > { %3325 = vmatmul.msk.bf16.gmra.mxu0 %vm236_vm2, %v1854_v43 }
 0x14b   : > { %v1473_v44 = vpop.f32.mrf.mxu2  ;;  %v1190_v1 = vpop.f32.mrf.mxu1 }
 0x14c   : > { %v1534_v34 = vadd.f32 %v1473_v44, %v1188_v21  ;;  %v1191_v59 = vadd.f32 %v1190_v1, %v3958_v32  ;;  %v2538_v44 = vld [vmem:[#allocation2 + $0x30] sm:$0xff] }
 0x14d   : > { %v1727_v0 = vpop.f32.mrf.mxu3 }
 0x14e   : > { %v1788_v14 = vadd.f32 %v1727_v0, %v1534_v34  ;;  %3274 = vmatmul.msk.bf16.gmra.mxu1 %vm236_vm2, %v899_v48  ;;  %v2537_v48 = vld [vmem:[#allocation2 + $0x28] sm:$0xff] }
 0x14f   : > { %v1954_v26 = vpop.f32.mrf.mxu0  ;;  %v2569_v46 = vpack.c.bf16 %v2538_v44, %v2537_v48 }
 0x150   : > { %3291 = vmatmul.msk.bf16.gmra.mxu2 %vm236_vm2, %v1378_v39  ;;  %v4209_v13 = vadd.f32 %v1949_v40, %v1788_v14  ;;  %v2794_v14 = vsel %vm3731_vm6, %v3789_v63, 0.0 }
 0x152   : > { %3308 = vmatmul.msk.bf16.gmra.mxu3 %vm236_vm2, %v1632_v54 }
 0x153   : > { %v1476_v52 = vpop.f32.mrf.mxu2  ;;  %v1192_v38 = vpop.f32.mrf.mxu1 }
 0x154   : > { %v1535_v43 = vadd.f32 %v1476_v52, %v1191_v59  ;;  %v1193_v0 = vadd.f32 %v1192_v38, %v3974_v7  ;;  %v2032_v59 = vld [vmem:[#allocation2 + $0x31] sm:$0xff]  ;;  %v2824_v38 = vpack.c.bf16 %v2794_v14, %v3794_v2  ;;  %v2540_v2 = vld [vmem:[#allocation2 + $0x40] sm:$0xff] }
 0x155   : > { %v1730_v18 = vpop.f32.mrf.mxu3  ;;  %v2287_v14 = vld [vmem:[#allocation2 + $0x47] sm:$0xff] }
 0x156   : > { %v1789_v30 = vadd.f32 %v1730_v18, %v1535_v43  ;;  %v2317_v18 = vsel %vm3727_vm5, %v3762_v53, 0.0 }
 0x157   : > { %v1957_v16 = vpop.f32.mrf.mxu0  ;;  %v2348_v44 = vpack.c.bf16 %v3769_v57, %v2317_v18  ;;  %v2796_v57 = vsel %vm3755_vm8, %v3820_v20, 0.0 }
 0x158   : > { %v4213_v58 = vadd.f32 %v1952_v28, %v1789_v30 }
 0x15a   : > { %3378 = vmatmul.msk.bf16.vlgmr.msra.gmra.mxu0 %vm236_vm2, %v3692_v56 }
 0x15b   : > { %v1478_v21 = vpop.f32.mrf.mxu2  ;;  %v1195_v40 = vpop.f32.mrf.mxu1 }
 0x15c   : > { %v1536_v32 = vadd.f32 %v1478_v21, %v1193_v0  ;;  %v1196_v7 = vadd.f32 %v1195_v40, %v3843_v45  ;;  %v2539_v40 = vld [vmem:[#allocation2 + $0x38] sm:$0xff] }
 0x15d   : > { %v1732_v1 = vpop.f32.mrf.mxu3 }
 0x15e   : > { %v1790_v24 = vadd.f32 %v1732_v1, %v1536_v32  ;;  %3327 = vmatmul.msk.bf16.vlgmr.msra.gmra.mxu1 %vm236_vm2, %v3678_v50 }
 0x15f   : > { %v1959_v34 = vpop.f32.mrf.mxu0 }
 0x160   : > { %3344 = vmatmul.msk.bf16.vlgmr.msra.gmra.mxu2 %vm236_vm2, %v3664_v42  ;;  %v4222_v28 = vadd.f32 %v1954_v26, %v1790_v24  ;;  %v2031_v42 = vld [vmem:[#allocation2 + $0x29] sm:$0xff]  ;;  %v2064_v26 = vsel %vm3731_vm6, %v2032_v59, 0.0 }
 0x161   : > { %v2094_v63 = vpack.c.bf16 %v2064_v26, %v2031_v42 }
 0x162   : > { %3361 = vmatmul.msk.bf16.vlgmr.msra.gmra.mxu3 %vm236_vm2, %v2569_v46 }
 0x163   : > { %v1481_v56 = vpop.f32.mrf.mxu2  ;;  %v1197_v39 = vpop.f32.mrf.mxu1 }
 0x164   : > { %v1537_v54 = vadd.f32 %v1481_v56, %v1196_v7  ;;  %v1198_v30 = vadd.f32 %v1197_v39, %v3870_v61  ;;  %v2034_v7 = vld [vmem:[#allocation2 + $0x41] sm:$0xff] }
 0x165   : > { %v1735_v50 = vpop.f32.mrf.mxu3 }
 0x166   : > { %v1791_v52 = vadd.f32 %v1735_v50, %v1537_v54  ;;  %v2825_v54 = vpack.c.bf16 %v2796_v57, %v3824_v25  ;;  %v2542_v25 = vld [vmem:[#allocation2 + $0x50] sm:$0xff] }
 0x167   : > { %v1962_v43 = vpop.f32.mrf.mxu0 }
 0x168   : > { %v4232_v45 = vadd.f32 %v1957_v16, %v1791_v52  ;;  %v2570_v16 = vpack.c.bf16 %v2540_v2, %v2539_v40  ;;  %v2288_v52 = vld [vmem:[#allocation2 + $0x4f] sm:$0xff] }
 0x16a   : > { %3379 = vmatmul.msk.bf16.gmra.mxu0 %vm236_vm2, %v2824_v38  ;;  %v2319_v38 = vsel %vm3751_vm7, %v2287_v14, 0.0 }
 0x16b   : > { %v1483_v0 = vpop.f32.mrf.mxu2  ;;  %v1200_v21 = vpop.f32.mrf.mxu1 }
 0x16c   : > { %v1538_v48 = vadd.f32 %v1483_v0, %v1198_v30  ;;  %v1201_v53 = vadd.f32 %v1200_v21, %v3886_v15  ;;  %v2066_v15 = vsel %vm3755_vm8, %v2034_v7, 0.0  ;;  %v2541_v30 = vld [vmem:[#allocation2 + $0x48] sm:$0xff]  ;;  %v2349_v0 = vpack.c.bf16 %v2288_v52, %v2319_v38  ;;  %v2290_v7 = vld [vmem:[#allocation2 + $0x5f] sm:$0xff] }
 0x16d   : > { %v1737_v31 = vpop.f32.mrf.mxu3 }
 0x16e   : > { %v1792_v32 = vadd.f32 %v1737_v31, %v1538_v48  ;;  %3328 = vmatmul.msk.bf16.gmra.mxu1 %vm236_vm2, %v2094_v63 }
 0x16f   : > { %v1964_v1 = vpop.f32.mrf.mxu0 }
 0x170   : > { %3345 = vmatmul.msk.bf16.gmra.mxu2 %vm236_vm2, %v2348_v44  ;;  %v4242_v6 = vadd.f32 %v1959_v34, %v1792_v32  ;;  %v2033_v34 = vld [vmem:[#allocation2 + $0x39] sm:$0xff]  ;;  %v2798_v44 = vsel %vm3785_vm10, %v3857_v55, 0.0  ;;  %v2036_v32 = vld [vmem:[#allocation2 + $0x51] sm:$0xff] }
 0x171   : > { %v2095_v42 = vpack.c.bf16 %v2066_v15, %v2033_v34  ;;  %v2543_v34 = vld [vmem:[#allocation2 + $0x58] sm:$0xff] }
 0x172   : > { %3362 = vmatmul.msk.bf16.gmra.mxu3 %vm236_vm2, %v2570_v16 }
 0x173   : > { %v1486_v61 = vpop.f32.mrf.mxu2  ;;  %v1202_v24 = vpop.f32.mrf.mxu1 }
 0x174   : > { %v1539_v46 = vadd.f32 %v1486_v61, %v1201_v53  ;;  %v1203_v20 = vadd.f32 %v1202_v24, %v3913_v12  ;;  %v2289_v61 = vld [vmem:[#allocation2 + $0x57] sm:$0xff]  ;;  %v2826_v24 = vpack.c.bf16 %v2798_v44, %v3863_v60  ;;  %v2544_v60 = vld [vmem:[#allocation2 + $0x60] sm:$0xff] }
 0x175   : > { %v1740_v56 = vpop.f32.mrf.mxu3 }
 0x176   : > { %v1793_v39 = vadd.f32 %v1740_v56, %v1539_v46  ;;  %v2321_v56 = vsel %vm3781_vm9, %v2289_v61, 0.0 }
 0x177   : > { %v1967_v59 = vpop.f32.mrf.mxu0  ;;  %v2350_v52 = vpack.c.bf16 %v2290_v7, %v2321_v56 }
 0x178   : > { %v4252_v50 = vadd.f32 %v1962_v43, %v1793_v39  ;;  %v2571_v43 = vpack.c.bf16 %v2542_v25, %v2541_v30  ;;  %v2038_v25 = vld [vmem:[#allocation2 + $0x61] sm:$0xff] }
 0x17a   : > { %3380 = vmatmul.msk.bf16.gmra.mxu0 %vm236_vm2, %v2825_v54 }
 0x17b   : > { %v1488_v26 = vpop.f32.mrf.mxu2  ;;  %v1205_v18 = vpop.f32.mrf.mxu1 }
 0x17c   : > { %v1540_v63 = vadd.f32 %v1488_v26, %v1203_v20  ;;  %v1206_v12 = vadd.f32 %v1205_v18, %v3929_v11  ;;  %v2068_v11 = vsel %vm3785_vm10, %v2036_v32, 0.0  ;;  %v2800_v18 = vsel %vm3816_vm12, %v3900_v27, 0.0  ;;  %v4780_v32 = vld [vmem:[#allocation24_spill] sm:$0xff] }
 0x17d   : > { %v1742_v21 = vpop.f32.mrf.mxu3  ;;  %vm3145_vm10 = vcmask 257024  }
 0x17e   : > { %v1794_v47 = vadd.f32 %v1742_v21, %v1540_v63  ;;  %3329 = vmatmul.msk.bf16.gmra.mxu1 %vm236_vm2, %v2095_v42  ;;  %v2291_v21 = vld [vmem:[#allocation2 + $0x67] sm:$0xff] }
 0x17f   : > { %v1969_v40 = vpop.f32.mrf.mxu0 }
 0x180   : > { %3346 = vmatmul.msk.bf16.gmra.mxu2 %vm236_vm2, %v2349_v0  ;;  %v4260_v23 = vadd.f32 %v1964_v1, %v1794_v47  ;;  %v2035_v1 = vld [vmem:[#allocation2 + $0x49] sm:$0xff] }
 0x181   : > { %v2096_v39 = vpack.c.bf16 %v2068_v11, %v2035_v1  ;;  %v4778_v47 = vld [vmem:[#allocation11_spill] sm:$0xff] }
 0x182   : > { %3363 = vmatmul.msk.bf16.gmra.mxu3 %vm236_vm2, %v2571_v43  ;;  %v2827_v43 = vpack.c.bf16 %v2800_v18, %v4778_v47  ;;  %v2546_v1 = vld [vmem:[#allocation2 + $0x70] sm:$0xff]  ;;  %v4784_v18 = vld [vmem:[#allocation17_spill] sm:$0xff] }
 0x183   : > { %v1491_v2 = vpop.f32.mrf.mxu2  ;;  %v1207_v48 = vpop.f32.mrf.mxu1 }
 0x184   : > { %v1541_v31 = vadd.f32 %v1491_v2, %v1206_v12  ;;  %v1208_v55 = vadd.f32 %v1207_v48, %v3956_v10  ;;  %v2292_v48 = vld [vmem:[#allocation2 + $0x6f] sm:$0xff] }
 0x185   : > { %v1745_v16 = vpop.f32.mrf.mxu3 }
 0x186   : > { %v1795_v53 = vadd.f32 %v1745_v16, %v1541_v31  ;;  %v2323_v31 = vsel %vm3812_vm11, %v2291_v21, 0.0  ;;  %v2294_v21 = vld [vmem:[#allocation2 + $0x7f] sm:$0xff] }
 0x187   : > { %v1972_v57 = vpop.f32.mrf.mxu0  ;;  %v2351_v7 = vpack.c.bf16 %v2292_v48, %v2323_v31 }
 0x188   : > { %v4270_v46 = vadd.f32 %v1967_v59, %v1795_v53  ;;  %v2572_v59 = vpack.c.bf16 %v2544_v60, %v2543_v34 }
 0x18a   : > { %3381 = vmatmul.msk.bf16.gmra.mxu0 %vm236_vm2, %v2826_v24  ;;  %v2545_v24 = vld [vmem:[#allocation2 + $0x68] sm:$0xff] }
 0x18b   : > { %v1493_v14 = vpop.f32.mrf.mxu2  ;;  %v1210_v54 = vpop.f32.mrf.mxu1 }
 0x18c   : > { %v1542_v15 = vadd.f32 %v1493_v14, %v1208_v55  ;;  %v1211_v10 = vadd.f32 %v1210_v54, %v3972_v4  ;;  %v2070_v4 = vsel %vm3816_vm12, %v2038_v25, 0.0  ;;  %v4781_v14 = vld [vmem:[#allocation5_spill] sm:$0xff] }
 0x18d   : > { %v1747_v38 = vpop.f32.mrf.mxu3 }
 0x18e   : > { %v1796_v51 = vadd.f32 %v1747_v38, %v1542_v15  ;;  %3330 = vmatmul.msk.bf16.gmra.mxu1 %vm236_vm2, %v2096_v39  ;;  %v4782_v15 = vld [vmem:[#allocation16_spill] sm:$0xff] }
 0x18f   : > { %v1974_v20 = vpop.f32.mrf.mxu0  ;;  %v2802_v38 = vsel %vm3853_vm14, %v4782_v15, 0.0  ;;  %v2042_v15 = vld [vmem:[#allocation2 + $0x81] sm:$0xff] }
 0x190   : > { %3347 = vmatmul.msk.bf16.gmra.mxu2 %vm236_vm2, %v2350_v52  ;;  %v4278_v62 = vadd.f32 %v1969_v40, %v1796_v51  ;;  %v2037_v40 = vld [vmem:[#allocation2 + $0x59] sm:$0xff] }
 0x191   : > { %v2097_v16 = vpack.c.bf16 %v2070_v4, %v2037_v40  ;;  %v4786_v40 = vld [vmem:[#allocation7_spill] sm:$0xff] }
 0x192   : > { %3364 = vmatmul.msk.bf16.gmra.mxu3 %vm236_vm2, %v2572_v59  ;;  %v2040_v59 = vld [vmem:[#allocation2 + $0x71] sm:$0xff] }
 0x193   : > { %v1496_v42 = vpop.f32.mrf.mxu2  ;;  %v1212_v26 = vpop.f32.mrf.mxu1 }
 0x194   : > { %v1543_v30 = vadd.f32 %v1496_v42, %v1211_v10  ;;  %v1213_v27 = vadd.f32 %v1212_v26, %v4780_v32  ;;  %v2293_v26 = vld [vmem:[#allocation2 + $0x77] sm:$0xff] }
 0x195   : > { %v1750_v63 = vpop.f32.mrf.mxu3  ;;  %v2547_v32 = vld [vmem:[#allocation2 + $0x78] sm:$0xff] }
 0x196   : > { %v1797_v0 = vadd.f32 %v1750_v63, %v1543_v30  ;;  %v2828_v30 = vpack.c.bf16 %v2802_v38, %v4784_v18  ;;  %v2072_v63 = vsel %vm3853_vm14, %v2040_v59, 0.0  ;;  %v4790_v59 = vld [vmem:[#allocation23_spill] sm:$0xff] }
 0x197   : > { %v1977_v12 = vpop.f32.mrf.mxu0 }
 0x198   : > { %v4288_v2 = vadd.f32 %v1972_v57, %v1797_v0  ;;  %v2573_v57 = vpack.c.bf16 %v2546_v1, %v2545_v24 }
 0x19a   : > { %3382 = vmatmul.msk.bf16.gmra.mxu0 %vm236_vm2, %v2827_v43  ;;  %v2325_v43 = vsel %vm3847_vm13, %v2293_v26, 0.0  ;;  %v2074_v26 = vsel %vm3896_vm0, %v2042_v15, 0.0 }
 0x19b   : > { %v1498_v53 = vpop.f32.mrf.mxu2  ;;  %v1215_v61 = vpop.f32.mrf.mxu1 }
 0x19c   : > { %v1544_v11 = vadd.f32 %v1498_v53, %v1213_v27  ;;  %v1216_v54 = vadd.f32 %v1215_v61, %v4781_v14  ;;  %v2548_v27 = vld [vmem:[#allocation2 + $0x80] sm:$0xff]  ;;  %v2352_v53 = vpack.c.bf16 %v2294_v21, %v2325_v43  ;;  %v4788_v14 = vld [vmem:[#allocation22_spill] sm:$0xff]  ;;  %v4792_v21 = vld [vmem:[#allocation12_spill] sm:$0xff] }
 0x19d   : > { %v1752_v56 = vpop.f32.mrf.mxu3 }
 0x19e   : > { %v1798_v19 = vadd.f32 %v1752_v56, %v1544_v11  ;;  %3331 = vmatmul.msk.bf16.gmra.mxu1 %vm236_vm2, %v2097_v16 }
 0x19f   : > { %v1979_v55 = vpop.f32.mrf.mxu0 }
 0x1a0   : > { %3348 = vmatmul.msk.bf16.gmra.mxu2 %vm236_vm2, %v2351_v7  ;;  %v4296_v39 = vadd.f32 %v1974_v20, %v1798_v19  ;;  %v2039_v20 = vld [vmem:[#allocation2 + $0x69] sm:$0xff]  ;;  %v4787_v7 = vld [vmem:[#allocation9_spill] sm:$0xff] }
 0x1a1   : > { %v2098_v48 = vpack.c.bf16 %v2072_v63, %v2039_v20  ;;  %v4798_v20 = vld [vmem:[#allocation18_spill] sm:$0xff] }
 0x1a2   : > { %3365 = vmatmul.msk.bf16.gmra.mxu3 %vm236_vm2, %v2573_v57 }
 0x1a3   : > { %v1501_v34 = vpop.f32.mrf.mxu2  ;;  %v1217_v60 = vpop.f32.mrf.mxu1 }
 0x1a4   : > { %v1545_v51 = vadd.f32 %v1501_v34, %v1216_v54  ;;  %v1218_v4 = vadd.f32 %v1217_v60, %v4786_v40  ;;  %v2804_v34 = vsel %vm3896_vm0, %v4788_v14, 0.0 }
 0x1a5   : > { %v1755_v10 = vpop.f32.mrf.mxu3 }
 0x1a6   : > { %v1799_v42 = vadd.f32 %v1755_v10, %v1545_v51  ;;  %v2295_v51 = vld [vmem:[#allocation2 + $0x87] sm:$0xff]  ;;  %v2829_v10 = vpack.c.bf16 %v2804_v34, %v4790_v59  ;;  %v2044_v34 = vld [vmem:[#allocation2 + $0x91] sm:$0xff] }
 0x1a7   : > { %v1982_v25 = vpop.f32.mrf.mxu0  ;;  %v2327_v63 = vsel %vm3890_vm15, %v2295_v51, 0.0  ;;  %v2076_v59 = vsel %vm3939_vm3, %v2044_v34, 0.0  ;;  %v2299_v34 = vld [vmem:[#allocation2 + $0xa7] sm:$0xff] }
 0x1a8   : > { %v4306_v0 = vadd.f32 %v1977_v12, %v1799_v42  ;;  %v2574_v12 = vpack.c.bf16 %v2548_v27, %v2547_v32 }
 0x1aa   : > { %3383 = vmatmul.msk.bf16.gmra.mxu0 %vm236_vm2, %v2828_v30  ;;  %v2296_v30 = vld [vmem:[#allocation2 + $0x8f] sm:$0xff] }
 0x1ab   : > { %v1503_v44 = vpop.f32.mrf.mxu2  ;;  %v1220_v31 = vpop.f32.mrf.mxu1  ;;  %v2353_v32 = vpack.c.bf16 %v2296_v30, %v2327_v63 }
 0x1ac   : > { %v1546_v16 = vadd.f32 %v1503_v44, %v1218_v4  ;;  %v1221_v56 = vadd.f32 %v1220_v31, %v4787_v7  ;;  %v2550_v44 = vld [vmem:[#allocation2 + $0x90] sm:$0xff] }
 0x1ad   : > { %v1757_v61 = vpop.f32.mrf.mxu3 }
 0x1ae   : > { %v1800_v24 = vadd.f32 %v1757_v61, %v1546_v16  ;;  %3332 = vmatmul.msk.bf16.gmra.mxu1 %vm236_vm2, %v2098_v48  ;;  %v2549_v48 = vld [vmem:[#allocation2 + $0x88] sm:$0xff] }
 0x1af   : > { %v1984_v1 = vpop.f32.mrf.mxu0 }
 0x1b0   : > { %3349 = vmatmul.msk.bf16.gmra.mxu2 %vm236_vm2, %v2352_v53  ;;  %v4314_v11 = vadd.f32 %v1979_v55, %v1800_v24  ;;  %v2041_v55 = vld [vmem:[#allocation2 + $0x79] sm:$0xff]  ;;  %v4793_v24 = vld [vmem:[#allocation14_spill] sm:$0xff] }
 0x1b1   : > { %v2099_v43 = vpack.c.bf16 %v2074_v26, %v2041_v55  ;;  %v2298_v55 = vld [vmem:[#allocation2 + $0x9f] sm:$0xff] }
 0x1b2   : > { %3366 = vmatmul.msk.bf16.gmra.mxu3 %vm236_vm2, %v2574_v12  ;;  %v4796_v26 = vld [vmem:[#allocation13_spill] sm:$0xff] }
 0x1b3   : > { %v1506_v19 = vpop.f32.mrf.mxu2  ;;  %v1222_v57 = vpop.f32.mrf.mxu1  ;;  %vm4797_vm5 = vnez %v4796_v26  ;;  %v4804_v26 = vld [vmem:[#allocation25_spill] sm:$0xff] }
 0x1b4   : > { %v1547_v60 = vadd.f32 %v1506_v19, %v1221_v56  ;;  %v1223_v47 = vadd.f32 %v1222_v57, %v4792_v21  ;;  %v4794_v19 = vld [vmem:[#allocation28_spill] sm:$0xff]  ;;  %v2046_v57 = vld [vmem:[#allocation2 + $0xa1] sm:$0xff] }
 0x1b5   : > { %v1760_v52 = vpop.f32.mrf.mxu3  ;;  %v2806_v14 = vsel %vm3939_vm3, %v4794_v19, 0.0  ;;  %vm4828_vm3 = vnez %v4766_v8  ;;  %v2563_v8 = vld [vmem:[#allocation2 + $0xf8] sm:$0xff] }
 0x1b6   : > { %v1801_v38 = vadd.f32 %v1760_v52, %v1547_v60  ;;  %v2297_v52 = vld [vmem:[#allocation2 + $0x97] sm:$0xff] }
 0x1b7   : > { %v1987_v42 = vpop.f32.mrf.mxu0  ;;  %v2329_v30 = vsel %vm4797_vm5, %v2297_v52, 0.0 }
 0x1b8   : > { %v4324_v18 = vadd.f32 %v1982_v25, %v1801_v38  ;;  %v2575_v25 = vpack.c.bf16 %v2550_v44, %v2549_v48  ;;  %v2830_v38 = vpack.c.bf16 %v2806_v14, %v4025_v36  ;;  %v2552_v36 = vld [vmem:[#allocation2 + $0xa0] sm:$0xff]  ;;  %v2354_v48 = vpack.c.bf16 %v2298_v55, %v2329_v30 }
 0x1ba   : > { %3384 = vmatmul.msk.bf16.gmra.mxu0 %vm236_vm2, %v2829_v10 }
 0x1bb   : > { %v1508_v40 = vpop.f32.mrf.mxu2  ;;  %v1225_v4 = vpop.f32.mrf.mxu1 }
 0x1bc   : > { %v1548_v31 = vadd.f32 %v1508_v40, %v1223_v47  ;;  %v1226_v12 = vadd.f32 %v1225_v4, %v4793_v24  ;;  %v2551_v40 = vld [vmem:[#allocation2 + $0x98] sm:$0xff] }
 0x1bd   : > { %v1762_v27 = vpop.f32.mrf.mxu3 }
 0x1be   : > { %v1802_v16 = vadd.f32 %v1762_v27, %v1548_v31  ;;  %3333 = vmatmul.msk.bf16.gmra.mxu1 %vm236_vm2, %v2099_v43 }
 0x1bf   : > { %v1989_v53 = vpop.f32.mrf.mxu0 }
 0x1c0   : > { %3350 = vmatmul.msk.bf16.gmra.mxu2 %vm236_vm2, %v2353_v32  ;;  %v4332_v61 = vadd.f32 %v1984_v1, %v1802_v16  ;;  %v2043_v1 = vld [vmem:[#allocation2 + $0x89] sm:$0xff]  ;;  %v4799_v16 = vld [vmem:[#allocation20_spill] sm:$0xff] }
 0x1c1   : > { %v2100_v21 = vpack.c.bf16 %v2076_v59, %v2043_v1  ;;  %v2300_v1 = vld [vmem:[#allocation2 + $0xaf] sm:$0xff] }
 0x1c2   : > { %3367 = vmatmul.msk.bf16.gmra.mxu3 %vm236_vm2, %v2575_v25  ;;  %v4802_v59 = vld [vmem:[#allocation19_spill] sm:$0xff] }
 0x1c3   : > { %v1511_v7 = vpop.f32.mrf.mxu2  ;;  %v1227_v56 = vpop.f32.mrf.mxu1  ;;  %vm4803_vm7 = vnez %v4802_v59 }
 0x1c4   : > { %v1549_v54 = vadd.f32 %v1511_v7, %v1226_v12  ;;  %v1228_v63 = vadd.f32 %v1227_v56, %v4798_v20  ;;  %v4800_v7 = vld [vmem:[#allocation21_spill] sm:$0xff]  ;;  %v2331_v55 = vsel %vm4803_vm7, %v2299_v34, 0.0  ;;  %v2047_v34 = vld [vmem:[#allocation2 + $0xa9] sm:$0xff]  ;;  %vm4833_vm7 = vnez %v4768_v17 }
 0x1c5   : > { %v1765_v60 = vpop.f32.mrf.mxu3  ;;  %vm4801_vm6 = vnez %v4800_v7  ;;  %v2048_v7 = vld [vmem:[#allocation2 + $0xb1] sm:$0xff] }
 0x1c6   : > { %v1803_v15 = vadd.f32 %v1765_v60, %v1549_v54  ;;  %v2808_v56 = vsel %vm4801_vm6, %v4052_v35, 0.0  ;;  %v2078_v52 = vsel %vm4801_vm6, %v2046_v57, 0.0  ;;  %v4378_v57 = vld [vmem:[%s4613_s2] ss:$0 sm:$0xff]  ;;  %vm4832_vm6 = vnez %v4770_v37  ;;  %v2565_v37 = vld [vmem:[#allocation2 + $0x108] sm:$0xff] }
 0x1c7   : > { %v1992_v51 = vpop.f32.mrf.mxu0  ;;  %v2831_v60 = vpack.c.bf16 %v2808_v56, %v4058_v29  ;;  %v2554_v29 = vld [vmem:[#allocation2 + $0xb0] sm:$0xff] }
 0x1c8   : > { %v4342_v10 = vadd.f32 %v1987_v42, %v1803_v15  ;;  %v2576_v42 = vpack.c.bf16 %v2552_v36, %v2551_v40 }
 0x1ca   : > { %3385 = vmatmul.msk.bf16.gmra.mxu0 %vm236_vm2, %v2830_v38 }
 0x1cb   : > { %v1513_v47 = vpop.f32.mrf.mxu2  ;;  %v1230_v43 = vpop.f32.mrf.mxu1 }
 0x1cc   : > { %v1550_v4 = vadd.f32 %v1513_v47, %v1228_v63  ;;  %v1231_v25 = vadd.f32 %v1230_v43, %v4799_v16  ;;  %v2355_v43 = vpack.c.bf16 %v2300_v1, %v2331_v55  ;;  %v4810_v55 = vld [vmem:[#allocation30_spill] sm:$0xff] }
 0x1cd   : > { %v1767_v44 = vpop.f32.mrf.mxu3 }
 0x1ce   : > { %v1804_v31 = vadd.f32 %v1767_v44, %v1550_v4  ;;  %3334 = vmatmul.msk.bf16.gmra.mxu1 %vm236_vm2, %v2100_v21  ;;  %v2553_v21 = vld [vmem:[#allocation2 + $0xa8] sm:$0xff]  ;;  %v4805_v44 = vld [vmem:[#allocation29_spill] sm:$0xff] }
 0x1cf   : > { %v1994_v32 = vpop.f32.mrf.mxu0 }
 0x1d0   : > { %3351 = vmatmul.msk.bf16.gmra.mxu2 %vm236_vm2, %v2354_v48  ;;  %v4350_v27 = vadd.f32 %v1989_v53, %v1804_v31  ;;  %v2045_v53 = vld [vmem:[#allocation2 + $0x99] sm:$0xff] }
 0x1d1   : > { %v2101_v30 = vpack.c.bf16 %v2078_v52, %v2045_v53  ;;  %v2302_v52 = vld [vmem:[#allocation2 + $0xbf] sm:$0xff] }
 0x1d2   : > { %3368 = vmatmul.msk.bf16.gmra.mxu3 %vm236_vm2, %v2576_v42 }
 0x1d3   : > { %v1516_v24 = vpop.f32.mrf.mxu2  ;;  %v1232_v12 = vpop.f32.mrf.mxu1 }
 0x1d4   : > { %v1551_v19 = vadd.f32 %v1516_v24, %v1231_v25  ;;  %v1233_v35 = vadd.f32 %v1232_v12, %v4804_v26  ;;  %v4806_v25 = vld [vmem:[#allocation27_spill] sm:$0xff] }
 0x1d5   : > { %v1770_v14 = vpop.f32.mrf.mxu3  ;;  %vm4807_vm8 = vnez %v4806_v25  ;;  %v4811_v25 = vld [vmem:[#allocation33_spill] sm:$0xff] }
 0x1d6   : > { %v1805_v54 = vadd.f32 %v1770_v14, %v1551_v19  ;;  %v2810_v24 = vsel %vm4807_vm8, %v4085_v3, 0.0  ;;  %v4808_v3 = vld [vmem:[#allocation26_spill] sm:$0xff] }
 0x1d7   : > { %v2901_v15 = vpop.f32.mrf.mxu0  ;;  %v2832_v14 = vpack.c.bf16 %v2810_v24, %v4091_v5  ;;  %vm4809_vm9 = vnez %v4808_v3  ;;  %v2303_v3 = vld [vmem:[#allocation2 + $0xc7] sm:$0xff] }
 0x1d8   : > { %v4360_v38 = vadd.f32 %v1992_v51, %v1805_v54  ;;  %v2577_v51 = vpack.c.bf16 %v2554_v29, %v2553_v21 }
 0x1da   : > { %3386 = vmatmul.msk.bf16.gmra.mxu0 %vm236_vm2, %v2831_v60  ;;  %v2080_v60 = vsel %vm4807_vm8, %v2048_v7, 0.0 }
 0x1db   : > { %v1518_v20 = vpop.f32.mrf.mxu2  ;;  %v2171_v63 = vpop.f32.mrf.mxu1 }
 0x1dc   : > { %v1552_v47 = vadd.f32 %v1518_v20, %v1233_v35  ;;  %v2251_v31 = vadd.f32 %v2171_v63, %v4805_v44  ;;  %v2102_v35 = vpack.c.bf16 %v2080_v60, %v2047_v34  ;;  %v2555_v20 = vld [vmem:[#allocation2 + $0xb8] sm:$0xff]  ;;  %v2556_v63 = vld [vmem:[#allocation2 + $0xc0] sm:$0xff] }
 0x1dd   : > { %v1772_v40 = vpop.f32.mrf.mxu3  ;;  %v2050_v34 = vld [vmem:[#allocation2 + $0xc1] sm:$0xff] }
 0x1de   : > { %v1806_v36 = vadd.f32 %v1772_v40, %v1552_v47  ;;  %3335 = vmatmul.msk.bf16.gmra.mxu1 %vm236_vm2, %v2101_v30 }
 0x1df   : > { %v2903_v4 = vpop.f32.mrf.mxu0 }
 0x1e0   : > { %3352 = vmatmul.msk.bf16.gmra.mxu2 %vm236_vm2, %v2355_v43  ;;  %v4368_v48 = vadd.f32 %v1994_v32, %v1806_v36  ;;  %v2301_v32 = vld [vmem:[#allocation2 + $0xb7] sm:$0xff]  ;;  %v2578_v36 = vpack.c.bf16 %v2556_v63, %v2555_v20 }
 0x1e1   : > { %v2333_v1 = vsel %vm4809_vm9, %v2301_v32, 0.0  ;;  %v4814_v20 = vld [vmem:[#allocation31_spill] sm:$0xff] }
 0x1e2   : > { %3369 = vmatmul.msk.bf16.gmra.mxu3 %vm236_vm2, %v2577_v51  ;;  %v2356_v47 = vpack.c.bf16 %v2302_v52, %v2333_v1  ;;  %vm4815_vm12 = vnez %v4814_v20 }
 0x1e3   : > { %v2425_v42 = vpop.f32.mrf.mxu2  ;;  %v2173_v16 = vpop.f32.mrf.mxu1  ;;  %v2335_v63 = vsel %vm4815_vm12, %v2303_v3, 0.0 }
 0x1e4   : > { %v2505_v12 = vadd.f32 %v2425_v42, %v2251_v31  ;;  %v2252_v26 = vadd.f32 %v2173_v16, %v4810_v55  ;;  %v4397_v42 = vld [vmem:[#allocation2 + $0xd1] sm:$0xff]  ;;  %v2049_v55 = vld [vmem:[#allocation2 + $0xb9] sm:$0xff] }
 0x1e5   : > { %v2647_v56 = vpop.f32.mrf.mxu3 }
 0x1e6   : > { %v2727_v19 = vadd.f32 %v2647_v56, %v2505_v12  ;;  %v4404_v56 = vld [vmem:[#allocation2 + $0xc9] sm:$0xff] }
 0x1e7   : > { %v2906_v54 = vpop.f32.mrf.mxu0 }
 0x1e8   : > { %v2981_v53 = vadd.f32 %v2901_v15, %v2727_v19  ;;  %v4812_v19 = vld [vmem:[#allocation32_spill] sm:$0xff] }
 0x1e9   : > { %vm4813_vm11 = vnez %v4812_v19 }
 0x1ea   : > { %v3017_v59 = vadd.f32 %v4378_v57, %v2981_v53  ;;  %3387 = vmatmul.msk.bf16.gmra.mxu0 %vm236_vm2, %v2832_v14 }
 0x1eb   : > { %v2427_v30 = vpop.f32.mrf.mxu2  ;;  %v2176_v5 = vpop.f32.mrf.mxu1 }
 0x1ec   : > { %v3049_v21 = vmax.f32 %v3017_v59, 0.0  ;;  %v2506_v29 = vadd.f32 %v2427_v30, %v2252_v26  ;;  %v2253_v24 = vadd.f32 %v2176_v5, %v4811_v25  ;;  %v2082_v26 = vsel %vm4813_vm11, %v2050_v34, 0.0  ;;  %v2304_v5 = vld [vmem:[#allocation2 + $0xcf] sm:$0xff] }
 0x1ed   : > { %v2649_v15 = vpop.f32.mrf.mxu3 }
 0x1ee   : > { %v3081_v43 = vmin.f32 %v3049_v21, 6.0  ;;  %v2728_v40 = vadd.f32 %v2649_v15, %v2506_v29  ;;  %3336 = vmatmul.msk.bf16.gmra.mxu1 %vm236_vm2, %v2102_v35  ;;  %v4816_v29 = vld [vmem:[#allocation34_spill] sm:$0xff]  ;;  %v2103_v15 = vpack.c.bf16 %v2082_v26, %v2049_v55  ;;  %v4818_v55 = vld [vmem:[#allocation36_spill] sm:$0xff] }
 0x1ef   : > { %v2908_v51 = vpop.f32.mrf.mxu0  ;;  %vm4819_vm13 = vnez %v4818_v55 }
 0x1f0   : > { %v3113_v44 = vpack.c.bf16 %v3081_v43, %v3081_v43  ;;  %v2982_v31 = vadd.f32 %v2903_v4, %v2728_v40  ;;  %3353 = vmatmul.msk.bf16.gmra.mxu2 %vm236_vm2, %v2356_v47  ;;  %v2812_v4 = vsel %vm4813_vm11, %v4397_v42, 0.0 }
 0x1f1   : > { %v2833_v1 = vpack.c.bf16 %v2812_v4, %v4404_v56 }
 0x1f2   : > { %3146 = vst.msk [vmem:[%s4394_s15] sm:$0xf] %vm3145_vm10, %v3113_v44  ;;  %v3018_v16 = vadd.f32 %v4378_v57, %v2982_v31  ;;  %3370 = vmatmul.msk.bf16.gmra.mxu3 %vm236_vm2, %v2578_v36  ;;  %v2557_v36 = vld [vmem:[#allocation2 + $0xc8] sm:$0xff]  ;;  %v2558_v44 = vld [vmem:[#allocation2 + $0xd0] sm:$0xff] }
 0x1f3   : > { %v2430_v12 = vpop.f32.mrf.mxu2  ;;  %v2178_v7 = vpop.f32.mrf.mxu1  ;;  %v2579_v19 = vpack.c.bf16 %v2558_v44, %v2557_v36  ;;  %v4820_v36 = vld [vmem:[#allocation35_spill] sm:$0xff] }
 0x1f4   : > { %v3050_v32 = vmax.f32 %v3018_v16, 0.0  ;;  %v2507_v14 = vadd.f32 %v2430_v12, %v2253_v24  ;;  %v2254_v47 = vadd.f32 %v2178_v7, %v4816_v29  ;;  %v2357_v16 = vpack.c.bf16 %v2304_v5, %v2335_v63  ;;  %v2305_v63 = vld [vmem:[#allocation2 + $0xd7] sm:$0xff] }
 0x1f5   : > { %v2652_v60 = vpop.f32.mrf.mxu3  ;;  %vm4821_vm14 = vnez %v4820_v36  ;;  %v2307_v36 = vld [vmem:[#allocation2 + $0xe7] sm:$0xff] }
 0x1f6   : > { %v3082_v53 = vmin.f32 %v3050_v32, 6.0  ;;  %v2729_v52 = vadd.f32 %v2652_v60, %v2507_v14  ;;  %v4421_v14 = vld [vmem:[#allocation2 + $0xe1] sm:$0xff]  ;;  %v2337_v44 = vsel %vm4821_vm14, %v2305_v63, 0.0  ;;  %v4823_v63 = vld [vmem:[#allocation40_spill] sm:$0xff] }
 0x1f7   : > { %v2911_v59 = vpop.f32.mrf.mxu0  ;;  %v4817_v60 = vld [vmem:[#allocation37_spill] sm:$0xff]  ;;  %vm4824_vm15 = vnez %v4823_v63 }
 0x1f8   : > { %v3114_v35 = vpack.c.bf16 %v3082_v53, %v3082_v53  ;;  %v2983_v30 = vadd.f32 %v2906_v54, %v2729_v52 }
 0x1fa   : > { %3147 = vst.msk [vmem:[%s4394_s15 + $0x4] sm:$0xf] %vm3145_vm10, %v3114_v35  ;;  %v3019_v21 = vadd.f32 %v4378_v57, %v2983_v30  ;;  %3388 = vmatmul.msk.bf16.gmra.mxu0 %vm236_vm2, %v2833_v1  ;;  %v2781_v1 = vld [vmem:[#allocation2 + $0xd9] sm:$0xff] }
 0x1fb   : > { %v2432_v43 = vpop.f32.mrf.mxu2  ;;  %v2181_v40 = vpop.f32.mrf.mxu1 }
 0x1fc   : > { %v3051_v31 = vmax.f32 %v3019_v21, 0.0  ;;  %v2508_v54 = vadd.f32 %v2432_v43, %v2254_v47  ;;  %v2255_v53 = vadd.f32 %v2181_v40, %v4817_v60  ;;  %v2084_v47 = vsel %vm4819_vm13, %v4397_v42, 0.0  ;;  %v2306_v40 = vld [vmem:[#allocation2 + $0xdf] sm:$0xff] }
 0x1fd   : > { %v2654_v25 = vpop.f32.mrf.mxu3  ;;  %v2559_v42 = vld [vmem:[#allocation2 + $0xd8] sm:$0xff] }
 0x1fe   : > { %v3083_v24 = vmin.f32 %v3051_v31, 6.0  ;;  %v2730_v12 = vadd.f32 %v2654_v25, %v2508_v54  ;;  %3337 = vmatmul.msk.bf16.gmra.mxu1 %vm236_vm2, %v2103_v15  ;;  %v4822_v54 = vld [vmem:[#allocation38_spill] sm:$0xff]  ;;  %v2104_v25 = vpack.c.bf16 %v2084_v47, %v4404_v56  ;;  %v4444_v56 = vld [vmem:[#allocation2 + $0xf1] sm:$0xff] }
 0x1ff   : > { %v2913_v4 = vpop.f32.mrf.mxu0 }
 0x200   : > { %v3115_v32 = vpack.c.bf16 %v3083_v24, %v3083_v24  ;;  %v2984_v7 = vadd.f32 %v2908_v51, %v2730_v12  ;;  %3354 = vmatmul.msk.bf16.gmra.mxu2 %vm236_vm2, %v2357_v16  ;;  %v2814_v51 = vsel %vm4819_vm13, %v4421_v14, 0.0 }
 0x201   : > { %v2834_v21 = vpack.c.bf16 %v2814_v51, %v2781_v1 }
 0x202   : > { %3148 = vst.msk [vmem:[%s4394_s15 + $0x8] sm:$0xf] %vm3145_vm10, %v3115_v32  ;;  %v3020_v34 = vadd.f32 %v4378_v57, %v2984_v7  ;;  %3371 = vmatmul.msk.bf16.gmra.mxu3 %vm236_vm2, %v2579_v19  ;;  %v2560_v19 = vld [vmem:[#allocation2 + $0xe0] sm:$0xff]  ;;  %v2358_v7 = vpack.c.bf16 %v2306_v40, %v2337_v44 }
 0x203   : > { %v2435_v52 = vpop.f32.mrf.mxu2  ;;  %v2183_v3 = vpop.f32.mrf.mxu1 }
 0x204   : > { %v3052_v26 = vmax.f32 %v3020_v34, 0.0  ;;  %v2509_v35 = vadd.f32 %v2435_v52, %v2255_v53  ;;  %v2256_v16 = vadd.f32 %v2183_v3, %v4822_v54  ;;  %v2580_v52 = vpack.c.bf16 %v2560_v19, %v2559_v42  ;;  %v4827_v19 = vld [vmem:[#allocation41_spill] sm:$0xff] }
 0x205   : > { %v2657_v30 = vpop.f32.mrf.mxu3 }
 0x206   : > { %v3084_v5 = vmin.f32 %v3052_v26, 6.0  ;;  %v2731_v20 = vadd.f32 %v2657_v30, %v2509_v35 }
 0x207   : > { %v2916_v29 = vpop.f32.mrf.mxu0 }
 0x208   : > { %v3116_v15 = vpack.c.bf16 %v3084_v5, %v3084_v5  ;;  %v2985_v43 = vadd.f32 %v2911_v59, %v2731_v20  ;;  %v2783_v20 = vld [vmem:[#allocation2 + $0xe9] sm:$0xff] }
 0x20a   : > { %3149 = vst.msk [vmem:[%s4394_s15 + $0xc] sm:$0xf] %vm3145_vm10, %v3116_v15  ;;  %v3021_v31 = vadd.f32 %v4378_v57, %v2985_v43  ;;  %3389 = vmatmul.msk.bf16.gmra.mxu0 %vm236_vm2, %v2834_v21 }
 0x20b   : > { %v2437_v24 = vpop.f32.mrf.mxu2  ;;  %v2186_v12 = vpop.f32.mrf.mxu1 }
 0x20c   : > { %v3053_v59 = vmax.f32 %v3021_v31, 0.0  ;;  %v2510_v32 = vadd.f32 %v2437_v24, %v2256_v16  ;;  %v2257_v35 = vadd.f32 %v2186_v12, %v4119_v41  ;;  %v2086_v41 = vsel %vm4824_vm15, %v4421_v14, 0.0  ;;  %v4825_v24 = vld [vmem:[#allocation39_spill] sm:$0xff] }
 0x20d   : > { %v2659_v34 = vpop.f32.mrf.mxu3  ;;  %vm4826_vm0 = vnez %v4825_v24  ;;  %v2562_v14 = vld [vmem:[#allocation2 + $0xf0] sm:$0xff] }
 0x20e   : > { %v3085_v60 = vmin.f32 %v3053_v59, 6.0  ;;  %v2732_v53 = vadd.f32 %v2659_v34, %v2510_v32  ;;  %3338 = vmatmul.msk.bf16.gmra.mxu1 %vm236_vm2, %v2104_v25  ;;  %v2308_v25 = vld [vmem:[#allocation2 + $0xef] sm:$0xff]  ;;  %v2339_v12 = vsel %vm4826_vm0, %v2307_v36, 0.0  ;;  %v2105_v32 = vpack.c.bf16 %v2086_v41, %v2781_v1  ;;  %v4466_v1 = vld [vmem:[#allocation2 + $0x101] sm:$0xff] }
 0x20f   : > { %v2918_v55 = vpop.f32.mrf.mxu0 }
 0x210   : > { %v3117_v3 = vpack.c.bf16 %v3085_v60, %v3085_v60  ;;  %v2986_v51 = vadd.f32 %v2913_v4, %v2732_v53  ;;  %3355 = vmatmul.msk.bf16.gmra.mxu2 %vm236_vm2, %v2358_v7  ;;  %v2816_v4 = vsel %vm4824_vm15, %v4444_v56, 0.0  ;;  %v2561_v60 = vld [vmem:[#allocation2 + $0xe8] sm:$0xff] }
 0x211   : > { %v2835_v44 = vpack.c.bf16 %v2816_v4, %v2783_v20 }
 0x212   : > { %3150 = vst.msk [vmem:[%s4394_s15 + $0x10] sm:$0xf] %vm3145_vm10, %v3117_v3  ;;  %v3022_v26 = vadd.f32 %v4378_v57, %v2986_v51  ;;  %3372 = vmatmul.msk.bf16.gmra.mxu3 %vm236_vm2, %v2580_v52  ;;  %v2359_v52 = vpack.c.bf16 %v2308_v25, %v2339_v12 }
 0x213   : > { %v2440_v30 = vpop.f32.mrf.mxu2  ;;  %v2188_v5 = vpop.f32.mrf.mxu1 }
 0x214   : > { %v3054_v21 = vmax.f32 %v3022_v26, 0.0  ;;  %v2511_v47 = vadd.f32 %v2440_v30, %v2257_v35  ;;  %v2258_v59 = vadd.f32 %v2188_v5, %v4827_v19  ;;  %v2581_v35 = vpack.c.bf16 %v2562_v14, %v2561_v60  ;;  %v2310_v19 = vld [vmem:[#allocation2 + $0xff] sm:$0xff] }
 0x215   : > { %v2662_v15 = vpop.f32.mrf.mxu3 }
 0x216   : > { %v3086_v43 = vmin.f32 %v3054_v21, 6.0  ;;  %v2733_v40 = vadd.f32 %v2662_v15, %v2511_v47 }
 0x217   : > { %v2921_v31 = vpop.f32.mrf.mxu0 }
 0x218   : > { %v3118_v54 = vpack.c.bf16 %v3086_v43, %v3086_v43  ;;  %v2987_v16 = vadd.f32 %v2916_v29, %v2733_v40  ;;  %v2785_v43 = vld [vmem:[#allocation2 + $0xf9] sm:$0xff] }
 0x21a   : > { %3151 = vst.msk [vmem:[%s4394_s15 + $0x14] sm:$0xf] %vm3145_vm10, %v3118_v54  ;;  %v3023_v42 = vadd.f32 %v4378_v57, %v2987_v16  ;;  %3390 = vmatmul.msk.bf16.gmra.mxu0 %vm236_vm2, %v2835_v44  ;;  %v2309_v16 = vld [vmem:[#allocation2 + $0xf7] sm:$0xff] }
 0x21b   : > { %v2442_v7 = vpop.f32.mrf.mxu2  ;;  %v2191_v34 = vpop.f32.mrf.mxu1 }
 0x21c   : > { %v3055_v53 = vmax.f32 %v3023_v42, 0.0  ;;  %v2512_v29 = vadd.f32 %v2442_v7, %v2258_v59  ;;  %v2259_v21 = vadd.f32 %v2191_v34, %v4147_v9  ;;  %v2088_v9 = vsel %vm4828_vm3, %v4444_v56, 0.0  ;;  %v4829_v59 = vld [vmem:[#allocation42_spill] sm:$0xff]  ;;  %v2564_v56 = vld [vmem:[#allocation2 + $0x100] sm:$0xff] }
 0x21d   : > { %v2664_v3 = vpop.f32.mrf.mxu3  ;;  %vm4830_vm5 = vnez %v4829_v59  ;;  %v2106_v60 = vpack.c.bf16 %v2088_v9, %v2783_v20  ;;  %v4488_v20 = vld [vmem:[#allocation2 + $0x111] sm:$0xff] }
 0x21e   : > { %v3087_v51 = vmin.f32 %v3055_v53, 6.0  ;;  %v2734_v26 = vadd.f32 %v2664_v3, %v2512_v29  ;;  %3339 = vmatmul.msk.bf16.gmra.mxu1 %vm236_vm2, %v2105_v32  ;;  %v2341_v32 = vsel %vm4830_vm5, %v2309_v16, 0.0 }
 0x21f   : > { %v2923_v30 = vpop.f32.mrf.mxu0 }
 0x220   : > { %v3119_v63 = vpack.c.bf16 %v3087_v51, %v3087_v51  ;;  %v2988_v5 = vadd.f32 %v2918_v55, %v2734_v26  ;;  %3356 = vmatmul.msk.bf16.gmra.mxu2 %vm236_vm2, %v2359_v52  ;;  %v2818_v55 = vsel %vm4828_vm3, %v4466_v1, 0.0  ;;  %v2360_v52 = vpack.c.bf16 %v2310_v19, %v2341_v32  ;;  %v2312_v32 = vld [vmem:[#allocation2 + $0x10f] sm:$0xff] }
 0x221   : > { %v2836_v25 = vpack.c.bf16 %v2818_v55, %v2785_v43 }
 0x222   : > { %3152 = vst.msk [vmem:[%s4394_s15 + $0x18] sm:$0xf] %vm3145_vm10, %v3119_v63  ;;  %v3024_v4 = vadd.f32 %v4378_v57, %v2988_v5  ;;  %3373 = vmatmul.msk.bf16.gmra.mxu3 %vm236_vm2, %v2581_v35  ;;  %v2582_v35 = vpack.c.bf16 %v2564_v56, %v2563_v8 }
 0x223   : > { %v2445_v47 = vpop.f32.mrf.mxu2  ;;  %v2193_v15 = vpop.f32.mrf.mxu1 }
 0x224   : > { %v3056_v40 = vmax.f32 %v3024_v4, 0.0  ;;  %v2513_v36 = vadd.f32 %v2445_v47, %v2259_v21  ;;  %v2260_v34 = vadd.f32 %v2193_v15, %v4159_v49  ;;  %v4831_v21 = vld [vmem:[#allocation43_spill] sm:$0xff] }
 0x225   : > { %v2667_v44 = vpop.f32.mrf.mxu3 }
 0x226   : > { %v3088_v41 = vmin.f32 %v3056_v40, 6.0  ;;  %v2735_v54 = vadd.f32 %v2667_v44, %v2513_v36  ;;  %v2787_v40 = vld [vmem:[#allocation2 + $0x109] sm:$0xff] }
 0x227   : > { %v2926_v24 = vpop.f32.mrf.mxu0 }
 0x228   : > { %v3120_v12 = vpack.c.bf16 %v3088_v41, %v3088_v41  ;;  %v2989_v42 = vadd.f32 %v2921_v31, %v2735_v54 }
 0x22a   : > { %3153 = vst.msk [vmem:[%s4394_s15 + $0x1c] sm:$0xf] %vm3145_vm10, %v3120_v12  ;;  %v3025_v7 = vadd.f32 %v4378_v57, %v2989_v42  ;;  %3391 = vmatmul.msk.bf16.gmra.mxu0 %vm236_vm2, %v2836_v25  ;;  %v2311_v25 = vld [vmem:[#allocation2 + $0x107] sm:$0xff]  ;;  %v2090_v42 = vsel %vm4832_vm6, %v4466_v1, 0.0  ;;  %v2566_v1 = vld [vmem:[#allocation2 + $0x110] sm:$0xff] }
 0x22b   : > { %v2447_v14 = vpop.f32.mrf.mxu2  ;;  %v2196_v53 = vpop.f32.mrf.mxu1 }
 0x22c   : > { %v3057_v29 = vmax.f32 %v3025_v7, 0.0  ;;  %v2514_v31 = vadd.f32 %v2447_v14, %v2260_v34  ;;  %v2261_v47 = vadd.f32 %v2196_v53, %v4831_v21  ;;  %v2343_v7 = vsel %vm4833_vm7, %v2311_v25, 0.0 }
 0x22d   : > { %v2669_v3 = vpop.f32.mrf.mxu3  ;;  %v2107_v53 = vpack.c.bf16 %v2090_v42, %v2785_v43  ;;  %v2790_v43 = vld [vmem:[#allocation2 + $0x121] sm:$0xff] }
 0x22e   : > { %v3089_v51 = vmin.f32 %v3057_v29, 6.0  ;;  %v2736_v26 = vadd.f32 %v2669_v3, %v2514_v31  ;;  %3340 = vmatmul.msk.bf16.gmra.mxu1 %vm236_vm2, %v2106_v60  ;;  %v4834_v60 = vld [vmem:[#allocation44_spill] sm:$0xff]  ;;  %v2361_v31 = vpack.c.bf16 %v2312_v32, %v2343_v7 }
 0x22f   : > { %v2928_v63 = vpop.f32.mrf.mxu0 }
 0x230   : > { %v3121_v5 = vpack.c.bf16 %v3089_v51, %v3089_v51  ;;  %v2990_v49 = vadd.f32 %v2923_v30, %v2736_v26  ;;  %3357 = vmatmul.msk.bf16.gmra.mxu2 %vm236_vm2, %v2360_v52  ;;  %v2820_v30 = vsel %vm4832_vm6, %v4488_v20, 0.0  ;;  %v2583_v51 = vpack.c.bf16 %v2566_v1, %v2565_v37 }
 0x231   : > { %v2837_v9 = vpack.c.bf16 %v2820_v30, %v2787_v40  ;;  %v2822_v30 = vsel %vm4193_vm1, %v2790_v43, 0.0 }
 0x232   : > { %3154 = vst.msk [vmem:[%s4394_s15 + $0x20] sm:$0xf] %vm3145_vm10, %v3121_v5  ;;  %v3026_v4 = vadd.f32 %v4378_v57, %v2990_v49  ;;  %3374 = vmatmul.msk.bf16.gmra.mxu3 %vm236_vm2, %v2582_v35 }
 0x233   : > { %v2450_v15 = vpop.f32.mrf.mxu2  ;;  %v2198_v55 = vpop.f32.mrf.mxu1 }
 0x234   : > { %v3058_v36 = vmax.f32 %v3026_v4, 0.0  ;;  %v2515_v44 = vadd.f32 %v2450_v15, %v2261_v47  ;;  %v2262_v14 = vadd.f32 %v2198_v55, %v4834_v60  ;;  %v2789_v15 = vld [vmem:[#allocation2 + $0x119] sm:$0xff] }
 0x235   : > { %v2672_v41 = vpop.f32.mrf.mxu3  ;;  %v2838_v25 = vpack.c.bf16 %v2822_v30, %v2789_v15 }
 0x236   : > { %v3090_v54 = vmin.f32 %v3058_v36, 6.0  ;;  %v2737_v16 = vadd.f32 %v2672_v41, %v2515_v44 }
 0x237   : > { %v2931_v12 = vpop.f32.mrf.mxu0 }
 0x238   : > { %v3122_v19 = vpack.c.bf16 %v3090_v54, %v3090_v54  ;;  %v2991_v59 = vadd.f32 %v2926_v24, %v2737_v16  ;;  %v2313_v16 = vld [vmem:[#allocation2 + $0x117] sm:$0xff] }
 0x239   : > { %v2345_v32 = vsel %vm4189_vm4, %v2313_v16, 0.0 }
 0x23a   : > { %3155 = vst.msk [vmem:[%s4394_s15 + $0x24] sm:$0xf] %vm3145_vm10, %v3122_v19  ;;  %v3027_v34 = vadd.f32 %v4378_v57, %v2991_v59  ;;  %3392 = vmatmul.msk.bf16.gmra.mxu0 %vm236_vm2, %v2837_v9  ;;  %v2314_v59 = vld [vmem:[#allocation2 + $0x11f] sm:$0xff] }
 0x23b   : > { %v2452_v8 = vpop.f32.mrf.mxu2  ;;  %v2201_v56 = vpop.f32.mrf.mxu1  ;;  %v2362_v37 = vpack.c.bf16 %v2314_v59, %v2345_v32 }
 0x23c   : > { %v3059_v29 = vmax.f32 %v3027_v34, 0.0  ;;  %v2516_v24 = vadd.f32 %v2452_v8, %v2262_v14  ;;  %v2263_v4 = vadd.f32 %v2201_v56, %v4199_v22  ;;  %v2092_v22 = vsel %vm4193_vm1, %v4488_v20, 0.0  ;;  %v2567_v8 = vld [vmem:[#allocation2 + $0x118] sm:$0xff]  ;;  %v2568_v20 = vld [vmem:[#allocation2 + $0x120] sm:$0xff] }
 0x23d   : > { %v2674_v52 = vpop.f32.mrf.mxu3  ;;  %v2108_v60 = vpack.c.bf16 %v2092_v22, %v2787_v40 }
 0x23e   : > { %v3091_v17 = vmin.f32 %v3059_v29, 6.0  ;;  %v2738_v3 = vadd.f32 %v2674_v52, %v2516_v24  ;;  %3341 = vmatmul.msk.bf16.gmra.mxu1 %vm236_vm2, %v2107_v53  ;;  %v2584_v24 = vpack.c.bf16 %v2568_v20, %v2567_v8 }
 0x23f   : > { %v2933_v26 = vpop.f32.mrf.mxu0 }
 0x240   : > { %v3123_v35 = vpack.c.bf16 %v3091_v17, %v3091_v17  ;;  %v2992_v5 = vadd.f32 %v2928_v63, %v2738_v3  ;;  %3358 = vmatmul.msk.bf16.gmra.mxu2 %vm236_vm2, %v2361_v31 }
 0x242   : > { %3156 = vst.msk [vmem:[%s4394_s15 + $0x28] sm:$0xf] %vm3145_vm10, %v3123_v35  ;;  %v3028_v49 = vadd.f32 %v4378_v57, %v2992_v5  ;;  %3375 = vmatmul.msk.bf16.gmra.mxu3 %vm236_vm2, %v2583_v51 }
 0x243   : > { %v2455_v21 = vpop.f32.mrf.mxu2  ;;  %v2203_v47 = vpop.f32.mrf.mxu1 }
 0x244   : > { %v3060_v36 = vmax.f32 %v3028_v49, 0.0  ;;  %v2517_v63 = vadd.f32 %v2455_v21, %v2263_v4  ;;  %v2264_v34 = vadd.f32 %v2203_v47, %v4209_v13 }
 0x245   : > { %v2677_v44 = vpop.f32.mrf.mxu3 }
 0x246   : > { %v3092_v41 = vmin.f32 %v3060_v36, 6.0  ;;  %v2739_v54 = vadd.f32 %v2677_v44, %v2517_v63 }
 0x247   : > { %v2936_v9 = vpop.f32.mrf.mxu0 }
 0x248   : > { %v3124_v42 = vpack.c.bf16 %v3092_v41, %v3092_v41  ;;  %v2993_v19 = vadd.f32 %v2931_v12, %v2739_v54 }
 0x24a   : > { %3157 = vst.msk [vmem:[%s4394_s15 + $0x2c] sm:$0xf] %vm3145_vm10, %v3124_v42  ;;  %v3029_v7 = vadd.f32 %v4378_v57, %v2993_v19  ;;  %3393 = vmatmul.msk.bf16.gmra.mxu0 %vm236_vm2, %v2838_v25 }
 0x24b   : > { %v2457_v14 = vpop.f32.mrf.mxu2  ;;  %v2206_v53 = vpop.f32.mrf.mxu1 }
 0x24c   : > { %v3061_v56 = vmax.f32 %v3029_v7, 0.0  ;;  %v2518_v12 = vadd.f32 %v2457_v14, %v2264_v34  ;;  %v2265_v17 = vadd.f32 %v2206_v53, %v4213_v58 }
 0x24d   : > { %v2679_v1 = vpop.f32.mrf.mxu3 }
 0x24e   : > { %v3093_v33 = vmin.f32 %v3061_v56, 6.0  ;;  %v2740_v29 = vadd.f32 %v2679_v1, %v2518_v12  ;;  %3342 = vmatmul.msk.bf16.gmra.mxu1 %vm236_vm2, %v2108_v60 }
 0x24f   : > { %v2938_v31 = vpop.f32.mrf.mxu0 }
 0x250   : > { %v3125_v52 = vpack.c.bf16 %v3093_v33, %v3093_v33  ;;  %v2994_v13 = vadd.f32 %v2933_v26, %v2740_v29  ;;  %3359 = vmatmul.msk.bf16.gmra.mxu2 %vm236_vm2, %v2362_v37 }
 0x252   : > { %3158 = vst.msk [vmem:[%s4394_s15 + $0x30] sm:$0xf] %vm3145_vm10, %v3125_v52  ;;  %v3030_v40 = vadd.f32 %v4378_v57, %v2994_v13  ;;  %3376 = vmatmul.msk.bf16.gmra.mxu3 %vm236_vm2, %v2584_v24 }
 0x253   : > { %v2460_v3 = vpop.f32.mrf.mxu2  ;;  %v2208_v51 = vpop.f32.mrf.mxu1 }
 0x254   : > { %v3062_v35 = vmax.f32 %v3030_v40, 0.0  ;;  %v2519_v5 = vadd.f32 %v2460_v3, %v2265_v17  ;;  %v2266_v55 = vadd.f32 %v2208_v51, %v4222_v28 }
 0x255   : > { %v2682_v43 = vpop.f32.mrf.mxu3 }
 0x256   : > { %v3094_v49 = vmin.f32 %v3062_v35, 6.0  ;;  %v2741_v4 = vadd.f32 %v2682_v43, %v2519_v5 }
 0x257   : > { %v2941_v21 = vpop.f32.mrf.mxu0 }
 0x258   : > { %v3126_v26 = vpack.c.bf16 %v3094_v49, %v3094_v49  ;;  %v2995_v47 = vadd.f32 %v2936_v9, %v2741_v4 }
 0x25a   : > { %3159 = vst.msk [vmem:[%s4394_s15 + $0x34] sm:$0xf] %vm3145_vm10, %v3126_v26  ;;  %v3031_v15 = vadd.f32 %v4378_v57, %v2995_v47 }
 0x25b   : > { %v2462_v58 = vpop.f32.mrf.mxu2  ;;  %v2211_v30 = vpop.f32.mrf.mxu1 }
 0x25c   : > { %v3063_v36 = vmax.f32 %v3031_v15, 0.0  ;;  %v2520_v63 = vadd.f32 %v2462_v58, %v2266_v55  ;;  %v2267_v42 = vadd.f32 %v2211_v30, %v4232_v45 }
 0x25d   : > { %v2684_v44 = vpop.f32.mrf.mxu3 }
 0x25e   : > { %v3095_v41 = vmin.f32 %v3063_v36, 6.0  ;;  %v2742_v54 = vadd.f32 %v2684_v44, %v2520_v63 }
 0x25f   : > { %v2943_v16 = vpop.f32.mrf.mxu0 }
 0x260   : > { %v3127_v25 = vpack.c.bf16 %v3095_v41, %v3095_v41  ;;  %v2996_v22 = vadd.f32 %v2938_v31, %v2742_v54 }
 0x262   : > { %3160 = vst.msk [vmem:[%s4394_s15 + $0x38] sm:$0xf] %vm3145_vm10, %v3127_v25  ;;  %v3032_v9 = vadd.f32 %v4378_v57, %v2996_v22 }
 0x263   : > { %v2465_v19 = vpop.f32.mrf.mxu2  ;;  %v2213_v59 = vpop.f32.mrf.mxu1 }
 0x264   : > { %v3064_v28 = vmax.f32 %v3032_v9, 0.0  ;;  %v2521_v32 = vadd.f32 %v2465_v19, %v2267_v42  ;;  %v2268_v56 = vadd.f32 %v2213_v59, %v4242_v6 }
 0x265   : > { %v2687_v7 = vpop.f32.mrf.mxu3 }
 0x266   : > { %v3096_v34 = vmin.f32 %v3064_v28, 6.0  ;;  %v2743_v60 = vadd.f32 %v2687_v7, %v2521_v32 }
 0x267   : > { %v2946_v14 = vpop.f32.mrf.mxu0 }
 0x268   : > { %v3128_v53 = vpack.c.bf16 %v3096_v34, %v3096_v34  ;;  %v2997_v8 = vadd.f32 %v2941_v21, %v2743_v60 }
 0x26a   : > { %3161 = vst.msk [vmem:[%s4394_s15 + $0x3c] sm:$0xf] %vm3145_vm10, %v3128_v53  ;;  %v3033_v20 = vadd.f32 %v4378_v57, %v2997_v8 }
 0x26b   : > { %v2467_v12 = vpop.f32.mrf.mxu2  ;;  %v2216_v37 = vpop.f32.mrf.mxu1 }
 0x26c   : > { %v3065_v45 = vmax.f32 %v3033_v20, 0.0  ;;  %v2522_v1 = vadd.f32 %v2467_v12, %v2268_v56  ;;  %v2269_v17 = vadd.f32 %v2216_v37, %v4252_v50 }
 0x26d   : > { %v2689_v33 = vpop.f32.mrf.mxu3 }
 0x26e   : > { %v3097_v29 = vmin.f32 %v3065_v45, 6.0  ;;  %v2744_v24 = vadd.f32 %v2689_v33, %v2522_v1 }
 0x26f   : > { %v2948_v31 = vpop.f32.mrf.mxu0 }
 0x270   : > { %v3129_v52 = vpack.c.bf16 %v3097_v29, %v3097_v29  ;;  %v2998_v13 = vadd.f32 %v2943_v16, %v2744_v24 }
 0x272   : > { %3162 = vst.msk [vmem:[%s4394_s15 + $0x40] sm:$0xf] %vm3145_vm10, %v3129_v52  ;;  %v3034_v40 = vadd.f32 %v4378_v57, %v2998_v13 }
 0x273   : > { %v2470_v3 = vpop.f32.mrf.mxu2  ;;  %v2218_v51 = vpop.f32.mrf.mxu1 }
 0x274   : > { %v3066_v6 = vmax.f32 %v3034_v40, 0.0  ;;  %v2523_v35 = vadd.f32 %v2470_v3, %v2269_v17  ;;  %v2270_v15 = vadd.f32 %v2218_v51, %v4260_v23 }
 0x275   : > { %v2692_v5 = vpop.f32.mrf.mxu3 }
 0x276   : > { %v3098_v43 = vmin.f32 %v3066_v6, 6.0  ;;  %v2745_v49 = vadd.f32 %v2692_v5, %v2523_v35 }
 0x277   : > { %v2951_v4 = vpop.f32.mrf.mxu0 }
 0x278   : > { %v3130_v21 = vpack.c.bf16 %v3098_v43, %v3098_v43  ;;  %v2999_v26 = vadd.f32 %v2946_v14, %v2745_v49 }
 0x27a   : > { %3163 = vst.msk [vmem:[%s4394_s15 + $0x44] sm:$0xf] %vm3145_vm10, %v3130_v21  ;;  %v3035_v47 = vadd.f32 %v4378_v57, %v2999_v26 }
 0x27b   : > { %v2472_v55 = vpop.f32.mrf.mxu2  ;;  %v2221_v58 = vpop.f32.mrf.mxu1 }
 0x27c   : > { %v3067_v50 = vmax.f32 %v3035_v47, 0.0  ;;  %v2524_v30 = vadd.f32 %v2472_v55, %v2270_v15  ;;  %v2271_v22 = vadd.f32 %v2221_v58, %v4270_v46 }
 0x27d   : > { %v2694_v36 = vpop.f32.mrf.mxu3 }
 0x27e   : > { %v3099_v63 = vmin.f32 %v3067_v50, 6.0  ;;  %v2746_v44 = vadd.f32 %v2694_v36, %v2524_v30 }
 0x27f   : > { %v2953_v41 = vpop.f32.mrf.mxu0 }
 0x280   : > { %v3131_v54 = vpack.c.bf16 %v3099_v63, %v3099_v63  ;;  %v3000_v16 = vadd.f32 %v2948_v31, %v2746_v44 }
 0x282   : > { %3164 = vst.msk [vmem:[%s4394_s15 + $0x48] sm:$0xf] %vm3145_vm10, %v3131_v54  ;;  %v3036_v25 = vadd.f32 %v4378_v57, %v3000_v16 }
 0x283   : > { %v2475_v9 = vpop.f32.mrf.mxu2  ;;  %v2223_v42 = vpop.f32.mrf.mxu1 }
 0x284   : > { %v3068_v23 = vmax.f32 %v3036_v25, 0.0  ;;  %v2525_v19 = vadd.f32 %v2475_v9, %v2271_v22  ;;  %v2272_v53 = vadd.f32 %v2223_v42, %v4278_v62 }
 0x285   : > { %v2697_v59 = vpop.f32.mrf.mxu3 }
 0x286   : > { %v3100_v28 = vmin.f32 %v3068_v23, 6.0  ;;  %v2747_v32 = vadd.f32 %v2697_v59, %v2525_v19 }
 0x287   : > { %v2956_v7 = vpop.f32.mrf.mxu0 }
 0x288   : > { %v3132_v34 = vpack.c.bf16 %v3100_v28, %v3100_v28  ;;  %v3001_v60 = vadd.f32 %v2951_v4, %v2747_v32 }
 0x28a   : > { %3165 = vst.msk [vmem:[%s4394_s15 + $0x4c] sm:$0xf] %vm3145_vm10, %v3132_v34  ;;  %v3037_v14 = vadd.f32 %v4378_v57, %v3001_v60 }
 0x28b   : > { %v2477_v8 = vpop.f32.mrf.mxu2  ;;  %v2226_v20 = vpop.f32.mrf.mxu1 }
 0x28c   : > { %v3069_v46 = vmax.f32 %v3037_v14, 0.0  ;;  %v2526_v56 = vadd.f32 %v2477_v8, %v2272_v53  ;;  %v2273_v31 = vadd.f32 %v2226_v20, %v4288_v2 }
 0x28d   : > { %v2699_v12 = vpop.f32.mrf.mxu3 }
 0x28e   : > { %v3101_v37 = vmin.f32 %v3069_v46, 6.0  ;;  %v2748_v45 = vadd.f32 %v2699_v12, %v2526_v56 }
 0x28f   : > { %v2958_v1 = vpop.f32.mrf.mxu0 }
 0x290   : > { %v3133_v33 = vpack.c.bf16 %v3101_v37, %v3101_v37  ;;  %v3002_v29 = vadd.f32 %v2953_v41, %v2748_v45 }
 0x292   : > { %3166 = vst.msk [vmem:[%s4394_s15 + $0x50] sm:$0xf] %vm3145_vm10, %v3133_v33  ;;  %v3038_v24 = vadd.f32 %v4378_v57, %v3002_v29 }
 0x293   : > { %v2480_v52 = vpop.f32.mrf.mxu2  ;;  %v2228_v13 = vpop.f32.mrf.mxu1 }
 0x294   : > { %v3070_v62 = vmax.f32 %v3038_v24, 0.0  ;;  %v2527_v40 = vadd.f32 %v2480_v52, %v2273_v31  ;;  %v2274_v49 = vadd.f32 %v2228_v13, %v4296_v39 }
 0x295   : > { %v2702_v17 = vpop.f32.mrf.mxu3 }
 0x296   : > { %v3102_v3 = vmin.f32 %v3070_v62, 6.0  ;;  %v2749_v51 = vadd.f32 %v2702_v17, %v2527_v40 }
 0x297   : > { %v2961_v5 = vpop.f32.mrf.mxu0 }
 0x298   : > { %v3134_v6 = vpack.c.bf16 %v3102_v3, %v3102_v3  ;;  %v3003_v35 = vadd.f32 %v2956_v7, %v2749_v51 }
 0x29a   : > { %3167 = vst.msk [vmem:[%s4394_s15 + $0x54] sm:$0xf] %vm3145_vm10, %v3134_v6  ;;  %v3039_v43 = vadd.f32 %v4378_v57, %v3003_v35 }
 0x29b   : > { %v2482_v4 = vpop.f32.mrf.mxu2  ;;  %v2231_v21 = vpop.f32.mrf.mxu1 }
 0x29c   : > { %v3071_v2 = vmax.f32 %v3039_v43, 0.0  ;;  %v2528_v26 = vadd.f32 %v2482_v4, %v2274_v49  ;;  %v2275_v36 = vadd.f32 %v2231_v21, %v4306_v0 }
 0x29d   : > { %v2704_v47 = vpop.f32.mrf.mxu3 }
 0x29e   : > { %v3103_v15 = vmin.f32 %v3071_v2, 6.0  ;;  %v2750_v55 = vadd.f32 %v2704_v47, %v2528_v26 }
 0x29f   : > { %v2963_v63 = vpop.f32.mrf.mxu0 }
 0x2a0   : > { %v3135_v58 = vpack.c.bf16 %v3103_v15, %v3103_v15  ;;  %v3004_v50 = vadd.f32 %v2958_v1, %v2750_v55 }
 0x2a2   : > { %3168 = vst.msk [vmem:[%s4394_s15 + $0x58] sm:$0xf] %vm3145_vm10, %v3135_v58  ;;  %v3040_v30 = vadd.f32 %v4378_v57, %v3004_v50 }
 0x2a3   : > { %v2485_v44 = vpop.f32.mrf.mxu2  ;;  %v2233_v41 = vpop.f32.mrf.mxu1 }
 0x2a4   : > { %v3072_v39 = vmax.f32 %v3040_v30, 0.0  ;;  %v2529_v54 = vadd.f32 %v2485_v44, %v2275_v36  ;;  %v2276_v19 = vadd.f32 %v2233_v41, %v4314_v11 }
 0x2a5   : > { %v2707_v16 = vpop.f32.mrf.mxu3 }
 0x2a6   : > { %v3104_v25 = vmin.f32 %v3072_v39, 6.0  ;;  %v2751_v22 = vadd.f32 %v2707_v16, %v2529_v54 }
 0x2a7   : > { %v2966_v34 = vpop.f32.mrf.mxu0 }
 0x2a8   : > { %v3136_v9 = vpack.c.bf16 %v3104_v25, %v3104_v25  ;;  %v3005_v42 = vadd.f32 %v2961_v5, %v2751_v22 }
 0x2aa   : > { %3169 = vst.msk [vmem:[%s4394_s15 + $0x5c] sm:$0xf] %vm3145_vm10, %v3136_v9  ;;  %v3041_v23 = vadd.f32 %v4378_v57, %v3005_v42 }
 0x2ab   : > { %v2487_v59 = vpop.f32.mrf.mxu2  ;;  %v2236_v28 = vpop.f32.mrf.mxu1 }
 0x2ac   : > { %v3073_v0 = vmax.f32 %v3041_v23, 0.0  ;;  %v2530_v32 = vadd.f32 %v2487_v59, %v2276_v19  ;;  %v2277_v46 = vadd.f32 %v2236_v28, %v4324_v18 }
 0x2ad   : > { %v2709_v7 = vpop.f32.mrf.mxu3 }
 0x2ae   : > { %v3105_v60 = vmin.f32 %v3073_v0, 6.0  ;;  %v2752_v14 = vadd.f32 %v2709_v7, %v2530_v32 }
 0x2af   : > { %v2968_v29 = vpop.f32.mrf.mxu0 }
 0x2b0   : > { %v3137_v53 = vpack.c.bf16 %v3105_v60, %v3105_v60  ;;  %v3006_v8 = vadd.f32 %v2963_v63, %v2752_v14 }
 0x2b2   : > { %3170 = vst.msk [vmem:[%s4394_s15 + $0x60] sm:$0xf] %vm3145_vm10, %v3137_v53  ;;  %v3042_v20 = vadd.f32 %v4378_v57, %v3006_v8  ;;  %v3491_v53 = vld [vmem:[%s4613_s2] ss:$0 sm:$0xff] }
 0x2b3   : > { %v2490_v56 = vpop.f32.mrf.mxu2  ;;  %v2238_v12 = vpop.f32.mrf.mxu1 }
 0x2b4   : > { %v3074_v11 = vmax.f32 %v3042_v20, 0.0  ;;  %v2531_v37 = vadd.f32 %v2490_v56, %v2277_v46  ;;  %v2278_v13 = vadd.f32 %v2238_v12, %v4332_v61 }
 0x2b5   : > { %v2712_v45 = vpop.f32.mrf.mxu3 }
 0x2b6   : > { %v3106_v1 = vmin.f32 %v3074_v11, 6.0  ;;  %v2753_v33 = vadd.f32 %v2712_v45, %v2531_v37 }
 0x2b7   : > { %v2971_v43 = vpop.f32.mrf.mxu0 }
 0x2b8   : > { %v3138_v24 = vpack.c.bf16 %v3106_v1, %v3106_v1  ;;  %v3007_v31 = vadd.f32 %v2966_v34, %v2753_v33 }
 0x2ba   : > { %3171 = vst.msk [vmem:[%s4394_s15 + $0x64] sm:$0xf] %vm3145_vm10, %v3138_v24  ;;  %v3043_v52 = vadd.f32 %v4378_v57, %v3007_v31 }
 0x2bb   : > { %v2492_v62 = vpop.f32.mrf.mxu2  ;;  %v2241_v40 = vpop.f32.mrf.mxu1 }
 0x2bc   : > { %v3075_v18 = vmax.f32 %v3043_v52, 0.0  ;;  %v2532_v17 = vadd.f32 %v2492_v62, %v2278_v13  ;;  %v2279_v4 = vadd.f32 %v2241_v40, %v4342_v10 }
 0x2bd   : > { %v2714_v3 = vpop.f32.mrf.mxu3 }
 0x2be   : > { %v3107_v51 = vmin.f32 %v3075_v18, 6.0  ;;  %v2754_v6 = vadd.f32 %v2714_v3, %v2532_v17 }
 0x2bf   : > { %v2973_v63 = vpop.f32.mrf.mxu0 }
 0x2c0   : > { %v3139_v35 = vpack.c.bf16 %v3107_v51, %v3107_v51  ;;  %v3008_v5 = vadd.f32 %v2968_v29, %v2754_v6 }
 0x2c2   : > { %3172 = vst.msk [vmem:[%s4394_s15 + $0x68] sm:$0xf] %vm3145_vm10, %v3139_v35  ;;  %v3044_v49 = vadd.f32 %v4378_v57, %v3008_v5 }
 0x2c3   : > { %v2495_v21 = vpop.f32.mrf.mxu2  ;;  %v2243_v2 = vpop.f32.mrf.mxu1 }
 0x2c4   : > { %v3076_v61 = vmax.f32 %v3044_v49, 0.0  ;;  %v2533_v26 = vadd.f32 %v2495_v21, %v2279_v4  ;;  %v2280_v36 = vadd.f32 %v2243_v2, %v4350_v27 }
 0x2c5   : > { %v2717_v47 = vpop.f32.mrf.mxu3 }
 0x2c6   : > { %v3108_v15 = vmin.f32 %v3076_v61, 6.0  ;;  %v2755_v55 = vadd.f32 %v2717_v47, %v2533_v26 }
 0x2c7   : > { %v2976_v28 = vpop.f32.mrf.mxu0 }
 0x2c8   : > { %v3140_v58 = vpack.c.bf16 %v3108_v15, %v3108_v15  ;;  %v3009_v50 = vadd.f32 %v2971_v43, %v2755_v55 }
 0x2ca   : > { %3173 = vst.msk [vmem:[%s4394_s15 + $0x6c] sm:$0xf] %vm3145_vm10, %v3140_v58  ;;  %v3045_v30 = vadd.f32 %v4378_v57, %v3009_v50 }
 0x2cb   : > { %v2497_v44 = vpop.f32.mrf.mxu2  ;;  %v2246_v54 = vpop.f32.mrf.mxu1 }
 0x2cc   : > { %v3077_v41 = vmax.f32 %v3045_v30, 0.0  ;;  %v2534_v10 = vadd.f32 %v2497_v44, %v2280_v36  ;;  %v2281_v23 = vadd.f32 %v2246_v54, %v4360_v38 }
 0x2cd   : > { %v2719_v39 = vpop.f32.mrf.mxu3 }
 0x2ce   : > { %v3109_v16 = vmin.f32 %v3077_v41, 6.0  ;;  %v2756_v25 = vadd.f32 %v2719_v39, %v2534_v10 }
 0x2cf   : > { %v2978_v37 = vpop.f32.mrf.mxu0 }
 0x2d0   : > { %v3141_v22 = vpack.c.bf16 %v3109_v16, %v3109_v16  ;;  %v3010_v9 = vadd.f32 %v2973_v63, %v2756_v25 }
 0x2d2   : > { %3174 = vst.msk [vmem:[%s4394_s15 + $0x70] sm:$0xf] %vm3145_vm10, %v3141_v22  ;;  %v3046_v42 = vadd.f32 %v4378_v57, %v3010_v9 }
 0x2d3   : > { %v2500_v19 = vpop.f32.mrf.mxu2  ;;  %v2248_v34 = vpop.f32.mrf.mxu1 }
 0x2d4   : > { %v3078_v59 = vmax.f32 %v3046_v42, 0.0  ;;  %v2535_v27 = vadd.f32 %v2500_v19, %v2281_v23  ;;  %v2282_v38 = vadd.f32 %v2248_v34, %v4368_v48 }
 0x2d5   : > { %v2722_v0 = vpop.f32.mrf.mxu3 }
 0x2d6   : > { %v3110_v32 = vmin.f32 %v3078_v59, 6.0  ;;  %v2757_v7 = vadd.f32 %v2722_v0, %v2535_v27 }
 0x2d8   : > { %v3142_v60 = vpack.c.bf16 %v3110_v32, %v3110_v32  ;;  %v3011_v14 = vadd.f32 %v2976_v28, %v2757_v7 }
 0x2da   : > { %3175 = vst.msk [vmem:[%s4394_s15 + $0x74] sm:$0xf] %vm3145_vm10, %v3142_v60  ;;  %v3047_v57 = vadd.f32 %v3491_v53, %v3011_v14 }
 0x2db   : > { %v2502_v8 = vpop.f32.mrf.mxu2 }
 0x2dc   : > { %v3079_v20 = vmax.f32 %v3047_v57, 0.0  ;;  %v2536_v46 = vadd.f32 %v2502_v8, %v2282_v38 }
 0x2dd   : > { %v2724_v56 = vpop.f32.mrf.mxu3 }
 0x2de   : > { %v3111_v12 = vmin.f32 %v3079_v20, 6.0  ;;  %v2758_v11 = vadd.f32 %v2724_v56, %v2536_v46 }
 0x2e0   : > { %v3143_v45 = vpack.c.bf16 %v3111_v12, %v3111_v12  ;;  %v3012_v1 = vadd.f32 %v2978_v37, %v2758_v11 }
 0x2e2   : > { %3176 = vst.msk [vmem:[%s4394_s15 + $0x78] sm:$0xf] %vm3145_vm10, %v3143_v45  ;;  %v3048_v33 = vadd.f32 %v3491_v53, %v3012_v1 }
 0x2e4   : > { %v3080_v29 = vmax.f32 %v3048_v33, 0.0 }
 0x2e6   : > { %v3112_v24 = vmin.f32 %v3080_v29, 6.0 }
 0x2e8   : > { %v3144_v31 = vpack.c.bf16 %v3112_v24, %v3112_v24 }
 0x2ea   : > { %3177 = vst.msk [vmem:[%s4394_s15 + $0x7c] sm:$0xf] %vm3145_vm10, %v3144_v31 }
 0x2eb PF: > { %s13_s12 = sadd.s32 1, %s3498_s12  }
 0x2ec   : > { %p10_p4 = scmp.ge.s32.totalorder %s13_s12, 4  }
 0x2ee   :  { %12 = sbr.rel (!%p10_p4) target bundleno = 1 (0x1), region = 70 }

</bundles_post_ra>
